<compile_context>
chip_gen: v6e
topology: v6e:2x2x1
jax: 0.10.0
libtpu: 0.0.40
codegen_flags: <defaults>
</compile_context>

<pallas_src>
import functools

import numpy as np
import jax
import jax.numpy as jnp
from jax.experimental import pallas as pl
from jax.experimental.pallas import tpu as pltpu


# -----------------------------------------------------------------------------
# Deterministic mel filterbank construction (Slaney scale + slaney norm),
# matching librosa.filters.mel defaults, implemented in pure numpy (host-side).
# -----------------------------------------------------------------------------
def _hz_to_mel(freqs):
    freqs = np.asarray(freqs, dtype=np.float64)
    f_min, f_sp = 0.0, 200.0 / 3
    mels = (freqs - f_min) / f_sp
    min_log_hz = 1000.0
    min_log_mel = (min_log_hz - f_min) / f_sp
    logstep = np.log(6.4) / 27.0
    log_region = freqs >= min_log_hz
    safe = np.maximum(freqs, 1e-10)
    mels = np.where(log_region,
                    min_log_mel + np.log(safe / min_log_hz) / logstep,
                    mels)
    return mels


def _mel_to_hz(mels):
    mels = np.asarray(mels, dtype=np.float64)
    f_min, f_sp = 0.0, 200.0 / 3
    freqs = f_min + f_sp * mels
    min_log_hz = 1000.0
    min_log_mel = (min_log_hz - f_min) / f_sp
    logstep = np.log(6.4) / 27.0
    log_region = mels >= min_log_mel
    freqs = np.where(log_region,
                     min_log_hz * np.exp(logstep * (mels - min_log_mel)),
                     freqs)
    return freqs


def mel_filterbank(sr, n_fft, n_mels, fmin, fmax):
    """Returns (n_mels, n_fft//2+1) float32 weights (librosa-style, slaney norm)."""
    n_freqs = n_fft // 2 + 1
    fftfreqs = np.linspace(0.0, sr / 2.0, n_freqs)
    mel_pts = np.linspace(_hz_to_mel(fmin), _hz_to_mel(fmax), n_mels + 2)
    hz_pts = _mel_to_hz(mel_pts)
    fdiff = np.diff(hz_pts)
    ramps = hz_pts[:, None] - fftfreqs[None, :]
    weights = np.zeros((n_mels, n_freqs), dtype=np.float64)
    for i in range(n_mels):
        lower = -ramps[i] / fdiff[i]
        upper = ramps[i + 2] / fdiff[i + 1]
        weights[i] = np.maximum(0.0, np.minimum(lower, upper))
    enorm = 2.0 / (hz_pts[2:n_mels + 2] - hz_pts[:n_mels])
    weights *= enorm[:, None]
    return weights.astype(np.float32)


# -----------------------------------------------------------------------------
# Pallas kernel: fused matmul + clamp(min=eps) + log10 on one row-tile.
# -----------------------------------------------------------------------------
def _mlfb_kernel(x_ref, mel_ref, o_ref, *, eps, f_main, precision):
    """x_ref: (tm, F), mel_ref: (F, M), o_ref: (tm, M).

    If 0 < f_main < F, the MXU matmul runs over the clean K = f_main prefix
    (a multiple of 128) and the remaining few K columns are added as rank-1
    VPU broadcast-multiplies, avoiding a ragged 1-of-128 MXU K pass.
    """
    F = x_ref.shape[1]
    if 0 < f_main < F:
        y = jnp.dot(x_ref[:, :f_main], mel_ref[:f_main, :],
                    preferred_element_type=jnp.float32, precision=precision)
        for k in range(f_main, F):            # static unroll, typically 1 term
            y = y + x_ref[:, k:k + 1] * mel_ref[k:k + 1, :]
    else:
        y = jnp.dot(x_ref[...], mel_ref[...],
                    preferred_element_type=jnp.float32, precision=precision)
    # NOTE: the ragged last grid block computes log10 on padded (unspecified)
    # rows; this is benign because rows are independent and Pallas masks the
    # out-of-bounds writeback. Do NOT add a cross-row reduction here.
    y = jnp.maximum(y, jnp.float32(eps))      # torch.clamp(min=eps)
    o_ref[...] = jnp.log10(y).astype(o_ref.dtype)


def _round_up(n, m):
    return ((n + m - 1) // m) * m


def _vmem_bytes_estimate(tm, F, M):
    lane = lambda n: _round_up(n, 128)
    x_tiles = 2 * tm * lane(F) * 4            # double-buffered x row tiles
    out_tiles = 2 * tm * lane(M) * 4          # double-buffered output tiles
    mel = 2 * _round_up(F, 8) * lane(M) * 4   # mel basis (pinned, 2 bufs worst case)
    temps = 2 * tm * lane(M) * 4              # in-kernel f32 temporaries
    return x_tiles + out_tiles + mel + temps


def mlfb_forward(x, mel_basis, eps=1e-10, block_rows=2048,
                 precision=jax.lax.Precision.HIGHEST):
    """x: (..., F) float32, mel_basis: (F, M) float32 -> (..., M) float32."""
    lead = x.shape[:-1]
    F = x.shape[-1]
    M = mel_basis.shape[1]
    rows = int(np.prod(lead)) if lead else 1
    x2 = x.reshape(rows, F)

    # --- Row tile size ---------------------------------------------------
    # * round user block_rows to a multiple of 8 (sublane rule),
    # * aim for >= 4 grid steps when rows permit (pipelining + v7x megacore),
    #   with a 256-row floor so each step still amortizes its fixed overhead,
    # * never exceed the (8-rounded) total row count.
    rows8 = _round_up(rows, 8)
    br = max(8, _round_up(int(block_rows), 8))
    target = max(256, _round_up(-(-rows // 4), 8))
    tm = min(br, rows8, target)
    grid = (pl.cdiv(rows, tm),)

    # --- K split: clean multiple-of-128 MXU pass + tiny VPU rank-1 tail ---
    rem = F % 128
    f_main = F - rem if (rem != 0 and rem <= 8 and F > 128) else F

    # --- Explicit VMEM budget (covers v5e's 16 MiB scoped default when tm
    #     is pushed up; stays within v7x's 64 MiB physical / 32 MiB scoped). --
    vmem_limit = int(min(max(2 * _vmem_bytes_estimate(tm, F, M), 24 << 20),
                         40 << 20))

    # Advisory cost so XLA can schedule/overlap the custom call sensibly.
    cost = pl.CostEstimate(
        flops=2 * rows * F * M,
        transcendentals=rows * M,
        bytes_accessed=4 * (rows * F + F * M + rows * M),
    )

    out = pl.pallas_call(
        functools.partial(_mlfb_kernel, eps=eps, f_main=f_main,
                          precision=precision),
        out_shape=jax.ShapeDtypeStruct((rows, M), jnp.float32),
        grid=grid,
        in_specs=[
            # x: streamed row tiles (double-buffered by Pallas).
            pl.BlockSpec((tm, F), lambda i: (i, 0)),
            # mel_basis: constant block index -> DMA'd once, pinned in VMEM.
            pl.BlockSpec((F, M), lambda i: (0, 0)),
        ],
        out_specs=pl.BlockSpec((tm, M), lambda i: (i, 0)),
        compiler_params=pltpu.CompilerParams(
            # Row tiles are independent -> megacore-shardable on v7x.
            dimension_semantics=("parallel",),
            vmem_limit_bytes=vmem_limit),
        cost_estimate=cost,
    )(x2, mel_basis)

    return out.reshape(*lead, M)


# -----------------------------------------------------------------------------
# Self-test
# -----------------------------------------------------------------------------
def _ref_f64(x, mel_basis, eps):
    """Accurate host-side float64 reference of the module's forward."""
    xf = np.asarray(x, dtype=np.float64)
    mf = np.asarray(mel_basis, dtype=np.float64)
    return np.log10(np.maximum(xf @ mf, eps))


if __name__ == "__main__":
    # MLFBLayer defaults from the PyTorch module (kept small in time dim).
    fs = 22050
    fft_size = 1024        # -> n_freqs = 513
    n_mels = 80
    eps = 1e-10

    n_freqs = fft_size // 2 + 1
    mel = mel_filterbank(fs, fft_size, n_mels, fmin=0.0, fmax=fs / 2.0)  # (M, F)
    mel_basis = jnp.asarray(mel.T)                                       # (F, M)

    key = jax.random.PRNGKey(0)
    k1, k2 = jax.random.split(key)

    # Tolerances: matmul runs at Precision.HIGHEST (true-f32), so the only
    # deltas vs the float64 reference are f32 rounding and the EUP log10
    # approximation (~1e-6 abs). A precision misconfiguration (bf16 1-pass,
    # ~1e-3) would still fail loudly.
    RTOL, ATOL = 1e-5, 1e-4

    # 1) Small input: single-block path (tm = rows), in-kernel K=512 + rank-1.
    B, T = 2, 8
    x_small = jax.random.uniform(k1, (B, T, n_freqs), dtype=jnp.float32)
    out_small = jax.block_until_ready(mlfb_forward(x_small, mel_basis, eps=eps))
    assert out_small.shape == (B, T, n_mels)
    np.testing.assert_allclose(np.asarray(out_small),
                               _ref_f64(x_small, mel_basis, eps),
                               rtol=RTOL, atol=ATOL)

    # 2) Larger input with defaults: >=4-step grid (tm=304, grid=4) with a
    #    ragged tail -> exercises pipelining / megacore split and OOB masking.
    B2, T2 = 2, 600        # 1200 rows
    x_big = jax.random.uniform(k2, (B2, T2, n_freqs), dtype=jnp.float32)
    out_big = jax.block_until_ready(mlfb_forward(x_big, mel_basis, eps=eps))
    assert out_big.shape == (B2, T2, n_mels)
    ref_big = _ref_f64(x_big, mel_basis, eps)
    np.testing.assert_allclose(np.asarray(out_big), ref_big,
                               rtol=RTOL, atol=ATOL)

    # 3) Non-multiple-of-8 block_rows (perf-review correctness concern):
    #    100 -> rounded to 104, 12-step grid, ragged tail.
    out_100 = jax.block_until_ready(
        mlfb_forward(x_big, mel_basis, eps=eps, block_rows=100))
    np.testing.assert_allclose(np.asarray(out_100), ref_big,
                               rtol=RTOL, atol=ATOL)

    print("KERNEL_OK")
</pallas_src>

<mosaic_0001>
module attributes {stable_mosaic.version = 11 : i64} {
  func.func @_mlfb_kernel(%arg0: i32, %arg1: memref<16x513xf32, #tpu.memory_space<vmem>>, %arg2: memref<513x80xf32, #tpu.memory_space<vmem>>, %arg3: memref<16x80xf32, #tpu.memory_space<vmem>>) attributes {dimension_semantics = [#tpu.dimension_semantics<parallel>], iteration_bounds = array<i64: 1>, scalar_prefetch = 0 : i64, scratch_operands = 0 : i64, tpu.core_type = #tpu.core_type<tc>, window_params = [{transform_indices = @transform_0, window_bounds = array<i64: 16, 513>}, {pipeline_mode = #tpu.pipeline_mode<synchronous>, transform_indices = @transform_1, window_bounds = array<i64: 513, 80>}, {transform_indices = @transform_2, window_bounds = array<i64: 16, 80>}]} {
    %c0 = arith.constant 0 : index
    %c0_0 = arith.constant 0 : index
    %0 = vector.load %arg1[%c0, %c0_0] : memref<16x513xf32, #tpu.memory_space<vmem>>, vector<16x512xf32>
    %c0_1 = arith.constant 0 : index
    %c0_2 = arith.constant 0 : index
    %1 = vector.load %arg2[%c0_1, %c0_2] : memref<513x80xf32, #tpu.memory_space<vmem>>, vector<512x80xf32>
    %cst = arith.constant dense<0.000000e+00> : vector<16x80xf32>
    %2 = tpu.matmul %0, %1, %cst {dimension_numbers = #tpu.dot_dimension_numbers<[1], [0], [0], [1], [0, 0, 1, 1], [], []>, precision = #tpu.contract_precision<fp32>} : vector<16x512xf32>, vector<512x80xf32>, vector<16x80xf32> -> vector<16x80xf32>
    %c0_3 = arith.constant 0 : index
    %c512 = arith.constant 512 : index
    %3 = vector.load %arg1[%c0_3, %c512] : memref<16x513xf32, #tpu.memory_space<vmem>>, vector<16x1xf32>
    %c512_4 = arith.constant 512 : index
    %c0_5 = arith.constant 0 : index
    %4 = vector.load %arg2[%c512_4, %c0_5] : memref<513x80xf32, #tpu.memory_space<vmem>>, vector<1x80xf32>
    %5 = vector.broadcast %3 : vector<16x1xf32> to vector<16x80xf32>
    %6 = vector.broadcast %4 : vector<1x80xf32> to vector<16x80xf32>
    %7 = arith.mulf %5, %6 : vector<16x80xf32>
    %8 = arith.addf %2, %7 : vector<16x80xf32>
    %cst_6 = arith.constant 1.000000e-10 : f32
    %9 = vector.broadcast %cst_6 : f32 to vector<16x80xf32>
    %10 = arith.maximumf %8, %9 : vector<16x80xf32>
    %11 = math.log %10 : vector<16x80xf32>
    %cst_7 = arith.constant 0.434294492 : f32
    %12 = vector.broadcast %cst_7 : f32 to vector<16x80xf32>
    %13 = arith.mulf %11, %12 : vector<16x80xf32>
    %c0_8 = arith.constant 0 : index
    %c0_9 = arith.constant 0 : index
    %14 = vector.load %arg3[%c0_8, %c0_9] : memref<16x80xf32, #tpu.memory_space<vmem>>, vector<16x80xf32>
    tpu.vector_store %arg3[%c0_8, %c0_9], %13 {strides = array<i32>} : memref<16x80xf32, #tpu.memory_space<vmem>>, vector<16x80xf32>,
    return
  }
  func.func @transform_0(%arg0: i32) -> (i32, i32) {
    %c0_i32 = arith.constant 0 : i32
    %c0_i32_0 = arith.constant 0 : i32
    return %arg0, %c0_i32 : i32, i32
  }
  func.func @transform_1(%arg0: i32) -> (i32, i32) {
    %c0_i32 = arith.constant 0 : i32
    %c0_i32_0 = arith.constant 0 : i32
    %c0_i32_1 = arith.constant 0 : i32
    return %c0_i32, %c0_i32_0 : i32, i32
  }
  func.func @transform_2(%arg0: i32) -> (i32, i32) {
    %c0_i32 = arith.constant 0 : i32
    %c0_i32_0 = arith.constant 0 : i32
    return %arg0, %c0_i32 : i32, i32
  }
}

</mosaic_0001>

<bundles_post_ra>
// kernel: tpu_custom_call.1
= control target key start
LH: loop header
LB: loop body
LE: loop exit
PB: predicated region body
PF: predicated region fallthrough
CT: control target
= control target key end

     0   :  { %v2454_v9 = vmov 0   ;;  %s3965_s0 = inlined_call_operand.vmem [shape: f32[16,513], index: 0, kind: input, shape index: {}]   ;;  %s3966_s1 = inlined_call_operand.vmem [shape: f32[513,80], index: 1, kind: input, shape index: {}]   ;;  %s3967_s2 = inlined_call_operand.hbm [shape: f32[16,80], index: 2, kind: output, shape index: {}]  }
   0x1   :  { %v51_v0 = vld [vmem:[%s3966_s1 + $0xf8] sm:$0xff]  ;;  %v50_v2 = vld [vmem:[%s3966_s1 + $0xf0] sm:$0xff]  ;;  %v49_v7 = vld [vmem:[%s3966_s1 + $0xe8] sm:$0xff]  ;;  %2427 = vset.pattern.permute.xlu0 %v2454_v9 }
   0x2   :  { %v35_v1 = vld [vmem:[%s3966_s1 + $0x78] sm:$0xff]  ;;  %v2482_v3 = vand.u32 4294901760, %v51_v0  ;;  %v2486_v5 = vand.u32 4294901760, %v50_v2  ;;  %v34_v6 = vld [vmem:[%s3966_s1 + $0x70] sm:$0xff]  ;;  %v33_v8 = vld [vmem:[%s3966_s1 + $0x68] sm:$0xff]  ;;  %v2499_v11 = vand.u32 4294901760, %v49_v7 }
   0x3   :  { %v2484_v4 = vand.u32 4294901760, %v35_v1  ;;  %v2497_v10 = vand.u32 4294901760, %v34_v6  ;;  %v2501_v12 = vand.u32 4294901760, %v33_v8  ;;  %v48_v13 = vld [vmem:[%s3966_s1 + $0xe0] sm:$0xff]  ;;  %v47_v15 = vld [vmem:[%s3966_s1 + $0xd8] sm:$0xff]  ;;  %v2530_v21 = vld [vmem:[%s3966_s1 + $0xd0] sm:$0xff] }
   0x4   :  { %v32_v14 = vld [vmem:[%s3966_s1 + $0x60] sm:$0xff]  ;;  %1967 = vmatprep.subr.mxu0 %v2482_v3  ;;  %v2513_v16 = vand.u32 4294901760, %v48_v13  ;;  %v2517_v18 = vand.u32 4294901760, %v47_v15  ;;  %v2520_v19 = vsub.f32 %v51_v0, %v2482_v3  ;;  %v2525_v20 = vld [vmem:[%s3966_s1 + $0x58] sm:$0xff]  ;;  %v2535_v22 = vld [vmem:[%s3966_s1 + $0x50] sm:$0xff]  ;;  %v2545_v25 = vand.u32 4294901760, %v2530_v21 }
   0x5   :  { %v2515_v17 = vand.u32 4294901760, %v32_v14  ;;  %1968 = vmatpush3.msra.mxu0 %v2484_v4  ;;  %v2539_v23 = vand.u32 4294901760, %v2525_v20  ;;  %v2542_v24 = vsub.f32 %v35_v1, %v2484_v4  ;;  %v2548_v26 = vsub.f32 %v50_v2, %v2486_v5  ;;  %v2553_v27 = vld [vmem:[%s3966_s1 + $0xc8] sm:$0xff]  ;;  %v2563_v29 = vld [vmem:[%s3966_s1 + $0xc0] sm:$0xff]  ;;  %v2615_v47 = vld [vmem:[%s3966_s1 + $0xb8] sm:$0xff] }
   0x6   :  { %v2558_v28 = vld [vmem:[%s3966_s1 + $0x48] sm:$0xff]  ;;  %1969 = vmatprep.subr.mxu0 %v2486_v5  ;;  %v3981_v30 = vand.u32 4294901760, %v2520_v19  ;;  %v2568_v31 = vand.u32 4294901760, %v2535_v22  ;;  %v2571_v32 = vsub.f32 %v34_v6, %v2497_v10  ;;  %v2574_v33 = vand.u32 4294901760, %v2553_v27  ;;  %v2588_v38 = vld [vmem:[%s3966_s1 + $0x40] sm:$0xff]  ;;  %v2628_v52 = vld [vmem:[%s3966_s1 + $0x38] sm:$0xff] }
   0x7   :  { %1970 = vmatpush3.msra.mxu0 %v2497_v10  ;;  %v3980_v34 = vand.u32 4294901760, %v2542_v24  ;;  %v3978_v35 = vand.u32 4294901760, %v2548_v26  ;;  %v2580_v36 = vsub.f32 %v49_v7, %v2499_v11  ;;  %v2583_v37 = vand.u32 4294901760, %v2558_v28  ;;  %v2638_v57 = vld [vmem:[%s3966_s1 + $0xb0] sm:$0xff]  ;;  %v2668_v6 = vld [vmem:[%s3966_s1 + $0xa8] sm:$0xff] }
   0x8   :  { %4123 = vst [vmem:[#allocation5_spill] sm:$0xff] %v2568_v31  ;;  %4124 = vst [vmem:[#allocation6_spill] sm:$0xff] %v2574_v33  ;;  %1971 = vmatprep.subr.mxu0 %v2499_v11  ;;  %v346_v39 = vsub.f32 %v2520_v19, %v3981_v30  ;;  %v3977_v40 = vand.u32 4294901760, %v2571_v32  ;;  %v2596_v41 = vsub.f32 %v33_v8, %v2501_v12  ;;  %v2599_v42 = vand.u32 4294901760, %v2563_v29  ;;  %v2653_v62 = vld [vmem:[%s3966_s1 + $0x30] sm:$0xff] }
   0x9   :  { %4125 = vst [vmem:[#allocation7_spill] sm:$0xff] %v2583_v37  ;;  %1972 = vmatpush3.msra.mxu0 %v2501_v12  ;;  %v234_v43 = vsub.f32 %v2542_v24, %v3980_v34  ;;  %v353_v44 = vsub.f32 %v2548_v26, %v3978_v35  ;;  %v3974_v45 = vand.u32 4294901760, %v2580_v36  ;;  %v2610_v46 = vsub.f32 %v48_v13, %v2513_v16  ;;  %v2807_v34 = vld [vmem:[%s3966_s1 + $0x88] sm:$0xff] }
   0xa   :  { %4126 = vst [vmem:[#allocation8_spill] sm:$0xff] %v2599_v42  ;;  %1973 = vmatprep.subr.mxu0 %v2513_v16  ;;  %v347_v48 = vand.u32 4294901760, %v346_v39  ;;  %v241_v49 = vsub.f32 %v2571_v32, %v3977_v40  ;;  %v3973_v50 = vand.u32 4294901760, %v2596_v41  ;;  %v2623_v51 = vand.u32 4294901760, %v2588_v38 }
   0xb   :  { %1974 = vmatpush3.msra.mxu0 %v2515_v17  ;;  %v235_v53 = vand.u32 4294901760, %v234_v43  ;;  %v354_v54 = vand.u32 4294901760, %v353_v44  ;;  %v360_v55 = vsub.f32 %v2580_v36, %v3974_v45  ;;  %v3971_v56 = vand.u32 4294901760, %v2610_v46  ;;  %v2764_v45 = vld [vmem:[%s3966_s1 + $0x18] sm:$0xff] }
   0xc   :  { %4127 = vst [vmem:[#allocation9_spill] sm:$0xff] %v2623_v51  ;;  %1975 = vmatprep.subr.mxu0 %v2517_v18  ;;  %2005 = vmatprep.subr.mxu1 %v347_v48  ;;  %v242_v58 = vand.u32 4294901760, %v241_v49  ;;  %v248_v59 = vsub.f32 %v2596_v41, %v3973_v50  ;;  %v2645_v60 = vsub.f32 %v32_v14, %v2515_v17  ;;  %v2648_v61 = vand.u32 4294901760, %v2615_v47  ;;  %v2682_v14 = vld [vmem:[%s3966_s1 + $0x28] sm:$0xff] }
   0xd   :  { %1976 = vmatpush3.msra.mxu0 %v2539_v23  ;;  %2006 = vmatpush3.msra.mxu1 %v235_v53  ;;  %v361_v63 = vand.u32 4294901760, %v360_v55  ;;  %v367_v0 = vsub.f32 %v2610_v46, %v3971_v56  ;;  %v2660_v1 = vsub.f32 %v47_v15, %v2517_v18  ;;  %v2663_v2 = vand.u32 4294901760, %v2628_v52 }
   0xe   :  { %4128 = vst [vmem:[#allocation10_spill] sm:$0xff] %v2648_v61  ;;  %1977 = vmatprep.subr.mxu0 %v2545_v25  ;;  %2007 = vmatprep.subr.mxu1 %v354_v54  ;;  %v249_v7 = vand.u32 4294901760, %v248_v59  ;;  %v3969_v8 = vand.u32 4294901760, %v2645_v60  ;;  %v2674_v9 = vsub.f32 %v2525_v20, %v2539_v23  ;;  %v2677_v13 = vand.u32 4294901760, %v2638_v57  ;;  %v84_v59 = vld [vmem:[%s3965_s0 + $0x20] sm:$0xff] }
   0xf   :  { %4129 = vst [vmem:[#allocation11_spill] sm:$0xff] %v2663_v2  ;;  %1978 = vmatpush3.msra.mxu0 %v2568_v31  ;;  %2008 = vmatpush3.msra.mxu1 %v242_v58  ;;  %v368_v15 = vand.u32 4294901760, %v367_v0  ;;  %v3968_v39 = vand.u32 4294901760, %v2660_v1  ;;  %v2688_v43 = vsub.f32 %v2530_v21, %v2545_v25  ;;  %v2691_v20 = vand.u32 4294901760, %v2653_v62  ;;  %v2708_v21 = vld [vmem:[%s3966_s1 + $0xa0] sm:$0xff] }
  0x10   :  { %4130 = vst [vmem:[#allocation12_spill] sm:$0xff] %v2677_v13  ;;  %1979 = vmatprep.subr.mxu0 %v2574_v33  ;;  %2009 = vmatprep.subr.mxu1 %v361_v63  ;;  %v255_v44 = vsub.f32 %v2645_v60, %v3969_v8  ;;  %v3970_v48 = vand.u32 4294901760, %v2674_v9  ;;  %v2700_v49 = vsub.f32 %v2535_v22, %v2568_v31  ;;  %v2703_v53 = vand.u32 4294901760, %v2668_v6 }
  0x11   :  { %4131 = vst [vmem:[#allocation13_spill] sm:$0xff] %v2691_v20  ;;  %1980 = vmatpush3.msra.mxu0 %v2583_v37  ;;  %2010 = vmatpush3.msra.mxu1 %v249_v7  ;;  %v374_v54 = vsub.f32 %v2660_v1, %v3968_v39  ;;  %v3972_v55 = vand.u32 4294901760, %v2688_v43  ;;  %v2717_v22 = vsub.f32 %v2553_v27, %v2574_v33  ;;  %v2720_v58 = vand.u32 4294901760, %v2682_v14  ;;  %v2737_v39 = vld [vmem:[%s3966_s1 + $0x20] sm:$0xff] }
  0x12   :  { %4132 = vst [vmem:[#allocation14_spill] sm:$0xff] %v2703_v53  ;;  %1981 = vmatprep.subr.mxu0 %v2599_v42  ;;  %2011 = vmatprep.subr.mxu1 %v368_v15  ;;  %v256_v63 = vand.u32 4294901760, %v255_v44  ;;  %v262_v0 = vsub.f32 %v2674_v9, %v3970_v48  ;;  %v3975_v7 = vand.u32 4294901760, %v2700_v49  ;;  %v2732_v27 = vsub.f32 %v2558_v28, %v2583_v37  ;;  %v2750_v28 = vld [vmem:[%s3966_s1 + $0x98] sm:$0xff] }
  0x13   :  { %4133 = vst [vmem:[#allocation15_spill] sm:$0xff] %v2720_v58  ;;  %1982 = vmatpush3.msra.mxu0 %v2623_v51  ;;  %v375_v8 = vand.u32 4294901760, %v374_v54  ;;  %v381_v15 = vsub.f32 %v2688_v43, %v3972_v55  ;;  %v3976_v44 = vand.u32 4294901760, %v2717_v22  ;;  %v2745_v48 = vand.u32 4294901760, %v2708_v21  ;;  %89 = vperm.xlu0 %2427, %v84_v59  }
  0x14   :  { %2012 = vmatpush3.msra.mxu1 %v256_v63  ;;  %1983 = vmatprep.subr.mxu0 %v2648_v61  ;;  %v263_v56 = vand.u32 4294901760, %v262_v0  ;;  %v269_v54 = vsub.f32 %v2700_v49, %v3975_v7  ;;  %v3979_v55 = vand.u32 4294901760, %v2732_v27  ;;  %v2759_v50 = vsub.f32 %v2563_v29, %v2599_v42  ;;  %v2780_v7 = vld [vmem:[%s3966_s1 + $0x90] sm:$0xff] }
  0x15   :  { %4134 = vst [vmem:[#allocation16_spill] sm:$0xff] %v2745_v48  ;;  %2013 = vmatprep.subr.mxu1 %v375_v8  ;;  %1984 = vmatpush3.msra.mxu0 %v2663_v2  ;;  %v382_v59 = vand.u32 4294901760, %v381_v15  ;;  %v388_v63 = vsub.f32 %v2717_v22, %v3976_v44  ;;  %v2771_v0 = vand.u32 4294901760, %v2737_v39  ;;  %v2775_v29 = vsub.f32 %v2588_v38, %v2623_v51  ;;  %v2793_v38 = vld [vmem:[%s3966_s1 + $0x10] sm:$0xff] }
  0x16   :  { %2014 = vmatpush3.msra.mxu1 %v263_v56  ;;  %1985 = vmatprep.subr.mxu0 %v2677_v13  ;;  %v270_v8 = vand.u32 4294901760, %v269_v54  ;;  %v276_v15 = vsub.f32 %v2732_v27, %v3979_v55  ;;  %v3984_v44 = vand.u32 4294901760, %v2759_v50  ;;  %v2788_v40 = vand.u32 4294901760, %v2750_v28 }
  0x17   :  { %4135 = vst [vmem:[#allocation17_spill] sm:$0xff] %v2771_v0  ;;  %2015 = vmatprep.subr.mxu1 %v382_v59  ;;  %1986 = vmatpush3.msra.mxu0 %v2691_v20  ;;  %v389_v56 = vand.u32 4294901760, %v388_v63  ;;  %v3985_v54 = vand.u32 4294901760, %v2775_v29  ;;  %v2799_v35 = vsub.f32 %v2615_v47, %v2648_v61  ;;  %v2802_v55 = vand.u32 4294901760, %v2764_v45 }
  0x18   :  { %4136 = vst [vmem:[#allocation18_spill] sm:$0xff] %v2788_v40  ;;  %2016 = vmatpush3.msra.mxu1 %v270_v8  ;;  %1987 = vmatprep.subr.mxu0 %v2703_v53  ;;  %v277_v59 = vand.u32 4294901760, %v276_v15  ;;  %v395_v63 = vsub.f32 %v2759_v50, %v3984_v44  ;;  %v2815_v47 = vsub.f32 %v2628_v52, %v2663_v2  ;;  %v2818_v30 = vand.u32 4294901760, %v2780_v7  ;;  %v2835_v52 = vld [vmem:[%s3966_s1 + $0x8] sm:$0xff] }
  0x19   :  { %4137 = vst [vmem:[#allocation19_spill] sm:$0xff] %v2802_v55  ;;  %2017 = vmatprep.subr.mxu1 %v389_v56  ;;  %1988 = vmatpush3.msra.mxu0 %v2720_v58  ;;  %v283_v8 = vsub.f32 %v2775_v29, %v3985_v54  ;;  %v2827_v61 = vsub.f32 %v2638_v57, %v2677_v13  ;;  %v2830_v44 = vand.u32 4294901760, %v2793_v38 }
  0x1b   :  { %4138 = vst [vmem:[#allocation20_spill] sm:$0xff] %v2830_v44 }
  0x1c   :  { %7 = vsyncpa [#allocation3], 0  ;;  %2018 = vmatpush3.msra.mxu1 %v277_v59  ;;  %1989 = vmatprep.subr.mxu0 %v2745_v48  ;;  %v396_v56 = vand.u32 4294901760, %v395_v63  ;;  %v2841_v15 = vsub.f32 %v2653_v62, %v2691_v20  ;;  %v2844_v57 = vand.u32 4294901760, %v2807_v34  ;;  %v2849_v13 = vld [vmem:[%s3966_s1 + $0x80] sm:$0xff]  ;;  %v284_v59 = vand.u32 4294901760, %v283_v8 }
  0x1d   :  { %1990 = vmatpush3.msra.mxu0 %v2771_v0  ;;  %v4141_v2 = vand.u32 4294901760, %v2799_v35  ;;  %v4002_v54 = vand.u32 4294901760, %v2827_v61  ;;  %v2858_v62 = vsub.f32 %v2668_v6, %v2703_v53  ;;  %v4143_v20 = vand.u32 4294901760, %v2815_v47  ;;  %v2875_v6 = vld [vmem:[%s3966_s1] sm:$0xff] }
  0x1e   :  { %4139 = vst [vmem:[#allocation21_spill] sm:$0xff] %v2841_v15  ;;  %4140 = vst [vmem:[#allocation22_spill] sm:$0xff] %v2844_v57  ;;  %2019 = vmatprep.subr.mxu1 %v396_v56  ;;  %1991 = vmatprep.subr.mxu0 %v2788_v40  ;;  %v2866_v8 = vand.u32 4294901760, %v2835_v52  ;;  %v2883_v53 = vand.u32 4294901760, %v2849_v13  ;;  %v12_v42 = vld [vmem:[%s3965_s0] sm:$0xff]  ;;  %v2909_v37 = vsub.f32 %v2737_v39, %v2771_v0  ;;  %vm1947_vm0 = vcmask 654336  }
  0x1f   :  { %v402_v63 = vsub.f32 %v2799_v35, %v4141_v2  ;;  %4142 = vst [vmem:[#allocation23_spill] sm:$0xff] %v2858_v62  ;;  %v290_v51 = vsub.f32 %v2815_v47, %v4143_v20  ;;  %v2870_v2 = vsub.f32 %v2682_v14, %v2720_v58  ;;  %2020 = vmatpush3.msra.mxu1 %v284_v59  ;;  %v13_v14 = vld [vmem:[%s3965_s0 + $0x8] sm:$0xff]  ;;  %v4145_v59 = vand.u32 4294901760, %v2841_v15 }
  0x20   :  { %1992 = vmatpush3.msra.mxu0 %v2802_v55  ;;  %v409_v20 = vsub.f32 %v2827_v61, %v4002_v54  ;;  %v2895_v54 = vsub.f32 %v2708_v21, %v2745_v48  ;;  %4147 = vst [vmem:[#allocation25_spill] sm:$0xff] %v2909_v37  ;;  %v2922_v39 = vsub.f32 %v2750_v28, %v2788_v40  ;;  %v85_v28 = vld [vmem:[%s3965_s0 + $0x48] sm:$0xff] }
  0x21   :  { %4144 = vst [vmem:[#allocation24_spill] sm:$0xff] %v2870_v2  ;;  %v403_v56 = vand.u32 4294901760, %v402_v63  ;;  %v291_v58 = vand.u32 4294901760, %v290_v51  ;;  %1993 = vmatprep.subr.mxu0 %v2818_v30  ;;  %v297_v63 = vsub.f32 %v2841_v15, %v4145_v59  ;;  %v4146_v51 = vand.u32 4294901760, %v2858_v62  ;;  %94 = vperm.xlu0 %2427, %v85_v28  }
  0x22   :  { %v410_v33 = vand.u32 4294901760, %v409_v20  ;;  %1994 = vmatpush3.msra.mxu0 %v2830_v44  ;;  %v2905_v59 = vand.u32 4294901760, %v2875_v6  ;;  %v4013_v48 = vand.u32 4294901760, %v2895_v54  ;;  %v2916_v15 = vand.u32 4294901760, %v13_v14 }
  0x23   :  { %2021 = vmatprep.subr.mxu1 %v403_v56  ;;  %v416_v31 = vsub.f32 %v2858_v62, %v4146_v51  ;;  %v298_v21 = vand.u32 4294901760, %v297_v63  ;;  %1995 = vmatprep.subr.mxu0 %v2844_v57  ;;  %v4148_v56 = vand.u32 4294901760, %v2870_v2  ;;  %v4016_v62 = vand.u32 4294901760, %v2909_v37 }
  0x24   :  { %2022 = vmatpush3.msra.mxu1 %v291_v58  ;;  %4149 = vst [vmem:[#allocation26_spill] sm:$0xff] %v2916_v15  ;;  %1996 = vmatpush3.msra.mxu0 %v2866_v8  ;;  %v2924_v58 = vand.u32 4294901760, %v12_v42 }
  0x25   :  { %v304_v20 = vsub.f32 %v2870_v2, %v4148_v56  ;;  %2023 = vmatprep.subr.mxu1 %v410_v33  ;;  %v417_v51 = vand.u32 4294901760, %v416_v31  ;;  %1997 = vmatprep.subr.mxu0 %v2883_v53  ;;  %v423_v56 = vsub.f32 %v2895_v54, %v4013_v48  ;;  %v2931_v31 = vsub.f32 %v13_v14, %v2916_v15 }
  0x26   :  { %4150 = vst [vmem:[#allocation27_spill] sm:$0xff] %v2924_v58  ;;  %2024 = vmatpush3.msra.mxu1 %v298_v21  ;;  %v2935_v33 = vsub.f32 %v2764_v45, %v2802_v55  ;;  %1998 = vmatpush3.msra.mxu0 %v2905_v59  ;;  %v311_v21 = vsub.f32 %v2909_v37, %v4016_v62 }
  0x27   :  { %v305_v63 = vand.u32 4294901760, %v304_v20  ;;  %2025 = vmatprep.subr.mxu1 %v417_v51  ;;  %v2946_v14 = vsub.f32 %v12_v42, %v2924_v58  ;;  %v2950_v45 = vsub.f32 %v2780_v7, %v2818_v30  ;;  %v424_v48 = vand.u32 4294901760, %v423_v56  ;;  %2043 = vmatprep.subr.mxu0 %v2520_v19 }
  0x28   :  { %4151 = vst [vmem:[#allocation28_spill] sm:$0xff] %v2935_v33  ;;  %v4019_v55 = vand.u32 4294901760, %v2931_v31  ;;  %v4022_v51 = vand.u32 4294901760, %v2935_v33  ;;  %v2957_v62 = vsub.f32 %v2793_v38, %v2830_v44  ;;  %v312_v20 = vand.u32 4294901760, %v311_v21  ;;  %455 = vmatprep.mubr.f32.mxu1 %v2916_v15 }
  0x29   :  { %2026 = vmatpush3.msra.mxu1 %v305_v63  ;;  %v4152_v42 = vand.u32 4294901760, %v2922_v39  ;;  %v4027_v7 = vand.u32 4294901760, %v2946_v14  ;;  %v4153_v28 = vand.u32 4294901760, %v2950_v45  ;;  %v2984_v15 = vsub.f32 %v2835_v52, %v2866_v8 }
  0x2a   :  { %2027 = vmatprep.subr.mxu1 %v424_v48  ;;  %v202_v56 = vsub.f32 %v2931_v31, %v4019_v55  ;;  %v318_v38 = vsub.f32 %v2935_v33, %v4022_v51  ;;  %v4155_v44 = vand.u32 4294901760, %v2957_v62 }
  0x2b   :  { %v430_v40 = vsub.f32 %v2922_v39, %v4152_v42  ;;  %v2974_v42 = vsub.f32 %v2807_v34, %v2844_v57  ;;  %2028 = vmatpush3.msra.mxu1 %v312_v20  ;;  %v208_v48 = vsub.f32 %v2946_v14, %v4027_v7  ;;  %v437_v55 = vsub.f32 %v2950_v45, %v4153_v28 }
  0x2c   :  { %4154 = vst [vmem:[#allocation29_spill] sm:$0xff] %v2984_v15  ;;  %v203_v51 = vand.u32 4294901760, %v202_v56  ;;  %v319_v21 = vand.u32 4294901760, %v318_v38  ;;  %v325_v34 = vsub.f32 %v2957_v62, %v4155_v44  ;;  %v4030_v7 = vand.u32 4294901760, %v2984_v15 }
  0x2d   :  { %v431_v63 = vand.u32 4294901760, %v430_v40  ;;  %v4031_v40 = vand.u32 4294901760, %v2974_v42  ;;  %v209_v20 = vand.u32 4294901760, %v208_v48  ;;  %v438_v57 = vand.u32 4294901760, %v437_v55  ;;  %v17_v48 = vld [vmem:[%s3965_s0 + $0x30] sm:$0xff] }
  0x2e   :  { %v2993_v28 = vsub.f32 %v2849_v13, %v2883_v53  ;;  %204 = vmatprep.mubr.f32.mxu0 %v203_v51  ;;  %v326_v52 = vand.u32 4294901760, %v325_v34  ;;  %v3000_v44 = vsub.f32 %v2875_v6, %v2905_v59  ;;  %v332_v55 = vsub.f32 %v2984_v15, %v4030_v7  ;;  %v4162_v7 = vld [vmem:[#allocation8_spill] sm:$0xff] }
  0x2f   :  { %2029 = vmatprep.subr.mxu1 %v431_v63  ;;  %v444_v56 = vsub.f32 %v2974_v42, %v4031_v40  ;;  %210 = vmatmul.mubr.f32.vlgmr.msra.gmra.mxu0 %v209_v20  ;;  %v16_v20 = vld [vmem:[%s3965_s0 + $0x28] sm:$0xff] }
  0x30   :  { %2030 = vmatpush3.msra.mxu1 %v319_v21  ;;  %4156 = vst [vmem:[#allocation30_spill] sm:$0xff] %v3000_v44  ;;  %v4029_v13 = vand.u32 4294901760, %v2993_v28  ;;  %2044 = vmatpush3.msra.mxu0 %v2542_v24  ;;  %v4028_v63 = vand.u32 4294901760, %v3000_v44  ;;  %v333_v38 = vand.u32 4294901760, %v332_v55 }
  0x31   :  { %2031 = vmatprep.subr.mxu1 %v438_v57  ;;  %v445_v51 = vand.u32 4294901760, %v444_v56  ;;  %2045 = vmatprep.subr.mxu0 %v2548_v26  ;;  %v3032_v56 = vand.u32 4294901760, %v16_v20 }
  0x32   :  { %2032 = vmatpush3.msra.mxu1 %v326_v52  ;;  %v451_v6 = vsub.f32 %v2993_v28, %v4029_v13  ;;  %2046 = vmatpush3.msra.mxu0 %v2571_v32  ;;  %v339_v57 = vsub.f32 %v3000_v44, %v4028_v63  ;;  %v3026_v52 = vand.u32 4294901760, %v17_v48  ;;  %v4161_v13 = vld [vmem:[#allocation7_spill] sm:$0xff] }
  0x33   :  { %2033 = vmatprep.subr.mxu1 %v445_v51  ;;  %2047 = vmatprep.subr.mxu0 %v2580_v36  ;;  %v3046_v51 = vsub.f32 %v16_v20, %v3032_v56  ;;  %v4160_v20 = vld [vmem:[#allocation6_spill] sm:$0xff] }
  0x34   :  { %2034 = vmatpush3.msra.mxu1 %v333_v38  ;;  %v452_v21 = vand.u32 4294901760, %v451_v6  ;;  %2048 = vmatpush3.msra.mxu0 %v2596_v41  ;;  %v340_v34 = vand.u32 4294901760, %v339_v57  ;;  %v3039_v55 = vsub.f32 %v17_v48, %v3026_v52  ;;  %v4157_v57 = vld [vmem:[#allocation21_spill] sm:$0xff] }
  0x35   :  { %2049 = vmatprep.subr.mxu0 %v2610_v46  ;;  %v4036_v6 = vand.u32 4294901760, %v3046_v51  ;;  %v4158_v48 = vld [vmem:[#allocation5_spill] sm:$0xff] }
  0x36   :  { %2035 = vmatprep.subr.mxu1 %v452_v21  ;;  %2050 = vmatpush3.msra.mxu0 %v2645_v60  ;;  %v4032_v38 = vand.u32 4294901760, %v3039_v55 }
  0x37   :  { %2036 = vmatpush3.msra.mxu1 %v340_v34  ;;  %2051 = vmatprep.subr.mxu0 %v2660_v1  ;;  %v4159_v34 = vld [vmem:[#allocation23_spill] sm:$0xff]  ;;  %v223_v63 = vsub.f32 %v3046_v51, %v4036_v6  ;;  %v4166_v6 = vld [vmem:[#allocation12_spill] sm:$0xff] }
  0x38   :  { %457 = vmatmul.mubr.f32.vlgmr.msra.gmra.mxu1 %v2924_v58  ;;  %2081 = vmatprep.subr.mxu1 %v2482_v3  ;;  %v217_v21 = vsub.f32 %v3039_v55, %v4032_v38  ;;  %v4163_v38 = vld [vmem:[#allocation9_spill] sm:$0xff]  ;;  %v4164_v58 = vld [vmem:[#allocation10_spill] sm:$0xff] }
  0x39   :  { %2052 = vmatpush3.msra.mxu0 %v2674_v9  ;;  %2082 = vmatpush3.msra.mxu1 %v2484_v4 }
  0x3a   :  { %2053 = vmatprep.subr.mxu0 %v2688_v43  ;;  %2083 = vmatprep.subr.mxu1 %v2486_v5  ;;  %v218_v40 = vand.u32 4294901760, %v217_v21  ;;  %v4168_v21 = vld [vmem:[#allocation14_spill] sm:$0xff] }
  0x3b   :  { %2054 = vmatpush3.msra.mxu0 %v2700_v49  ;;  %2084 = vmatpush3.msra.mxu1 %v2497_v10 }
  0x3c   :  { %2055 = vmatprep.subr.mxu0 %v2717_v22  ;;  %2085 = vmatprep.subr.mxu1 %v2499_v11 }
  0x3d   :  { %2056 = vmatpush3.msra.mxu0 %v2732_v27  ;;  %2086 = vmatpush3.msra.mxu1 %v2501_v12 }
  0x3e   :  { %2057 = vmatprep.subr.mxu0 %v2759_v50  ;;  %2087 = vmatprep.subr.mxu1 %v2513_v16 }
  0x3f   :  { %2058 = vmatpush3.msra.mxu0 %v2775_v29  ;;  %2088 = vmatpush3.msra.mxu1 %v2515_v17 }
  0x40   :  { %2059 = vmatprep.subr.mxu0 %v2799_v35  ;;  %2089 = vmatprep.subr.mxu1 %v2517_v18 }
  0x41   :  { %2060 = vmatpush3.msra.mxu0 %v2815_v47  ;;  %2090 = vmatpush3.msra.mxu1 %v2539_v23 }
  0x42   :  { %2061 = vmatprep.subr.mxu0 %v2827_v61  ;;  %2091 = vmatprep.subr.mxu1 %v2545_v25 }
  0x43   :  { %2062 = vmatpush3.msra.mxu0 %v4157_v57  ;;  %2092 = vmatpush3.msra.mxu1 %v4158_v48 }
  0x44   :  { %2063 = vmatprep.subr.mxu0 %v4159_v34  ;;  %2093 = vmatprep.subr.mxu1 %v4160_v20  ;;  %v4165_v20 = vld [vmem:[#allocation11_spill] sm:$0xff] }
  0x45   :  { %2064 = vmatpush3.msra.mxu0 %v2870_v2  ;;  %2094 = vmatpush3.msra.mxu1 %v4161_v13  ;;  %v224_v2 = vand.u32 4294901760, %v223_v63  ;;  %v4170_v63 = vld [vmem:[#allocation16_spill] sm:$0xff] }
  0x46   :  { %2065 = vmatprep.subr.mxu0 %v2895_v54  ;;  %2095 = vmatprep.subr.mxu1 %v4162_v7 }
  0x47   :  { %2066 = vmatpush3.msra.mxu0 %v2909_v37  ;;  %2096 = vmatpush3.msra.mxu1 %v4163_v38  ;;  %v4167_v37 = vld [vmem:[#allocation13_spill] sm:$0xff] }
  0x48   :  { %2067 = vmatprep.subr.mxu0 %v2922_v39  ;;  %2097 = vmatprep.subr.mxu1 %v4164_v58 }
  0x49   :  { %2068 = vmatpush3.msra.mxu0 %v2935_v33  ;;  %2098 = vmatpush3.msra.mxu1 %v4165_v20  ;;  %v4169_v33 = vld [vmem:[#allocation15_spill] sm:$0xff] }
  0x4a   :  { %2069 = vmatprep.subr.mxu0 %v2950_v45  ;;  %2099 = vmatprep.subr.mxu1 %v4166_v6 }
  0x4b   :  { %219 = vmatprep.mubr.f32.mxu0 %v218_v40  ;;  %2070 = vmatpush3.msra.mxu0 %v2957_v62  ;;  %v4172_v40 = vand.u32 4294901760, %v2520_v19  ;;  %v4178_v19 = vld [vmem:[#allocation22_spill] sm:$0xff] }
  0x4c   :  { %2100 = vmatpush3.msra.mxu1 %v4167_v37  ;;  %225 = vmatmul.mubr.f32.gmra.mxu0 %v224_v2  ;;  %v4171_v2 = vld [vmem:[#allocation18_spill] sm:$0xff] }
  0x4d   :  { %2071 = vmatprep.subr.mxu0 %v2974_v42  ;;  %2101 = vmatprep.subr.mxu1 %v4168_v21 }
  0x4e   :  { %2072 = vmatpush3.msra.mxu0 %v2984_v15  ;;  %2102 = vmatpush3.msra.mxu1 %v4169_v33  ;;  %v4173_v15 = vld [vmem:[#allocation19_spill] sm:$0xff]  ;;  %v4174_v33 = vand.u32 4294901760, %v2542_v24  ;;  %v4179_v24 = vand.u32 4294901760, %v2580_v36  ;;  %v4183_v36 = vand.u32 4294901760, %v2645_v60  ;;  %v4188_v60 = vand.u32 4294901760, %v3039_v55 }
  0x4f   :  { %2073 = vmatprep.subr.mxu0 %v2993_v28  ;;  %2103 = vmatprep.subr.mxu1 %v4170_v63 }
  0x50   :  { %2074 = vmatpush3.msra.mxu0 %v3000_v44  ;;  %599 = vmatprep.mubr.f32.mxu0 %v2931_v31  ;;  %v4175_v44 = vand.u32 4294901760, %v2548_v26  ;;  %v4180_v26 = vand.u32 4294901760, %v2596_v41  ;;  %v4186_v41 = vand.u32 4294901760, %v2674_v9  ;;  %v4193_v9 = vand.u32 4294901760, %v2759_v50  ;;  %v66_v50 = vld [vmem:[%s3966_s1 + $0x170] sm:$0xff] }
  0x51   :  { %2104 = vmatpush3.msra.mxu1 %v2771_v0  ;;  %602 = vmatmul.mubr.f32.vlgmr.msra.gmra.mxu0 %v2946_v14  ;;  %v4176_v0 = vand.u32 4294901760, %v2571_v32  ;;  %v4181_v32 = vand.u32 4294901760, %v2610_v46  ;;  %v4187_v46 = vand.u32 4294901760, %v2688_v43  ;;  %v4195_v43 = vand.u32 4294901760, %v2799_v35 }
  0x52   :  { %2105 = vmatprep.subr.mxu1 %v4171_v2  ;;  %2119 = vmatprep.subr.mxu0 %v4172_v40  ;;  %v4177_v2 = vld [vmem:[#allocation20_spill] sm:$0xff]  ;;  %v64_v40 = vld [vmem:[%s3966_s1 + $0x160] sm:$0xff] }
  0x53   :  { %2106 = vmatpush3.msra.mxu1 %v4173_v15  ;;  %2120 = vmatpush3.msra.mxu0 %v4174_v33  ;;  %v4184_v33 = vand.u32 4294901760, %v2946_v14  ;;  %v4202_v14 = vld [vmem:[#allocation24_spill] sm:$0xff] }
  0x54   :  { %462 = vmatprep.mubr.f32.mxu1 %v3026_v52  ;;  %2107 = vmatprep.subr.mxu1 %v2818_v30 }
  0x55   :  { %2121 = vmatprep.subr.mxu0 %v4175_v44  ;;  %464 = vmatmul.mubr.f32.gmra.mxu1 %v3032_v56  ;;  %v4185_v44 = vand.u32 4294901760, %v2660_v1  ;;  %v4191_v1 = vand.u32 4294901760, %v2717_v22  ;;  %v4198_v22 = vand.u32 4294901760, %v4157_v57  ;;  %v4205_v57 = vand.u32 4294901760, %v2895_v54 }
  0x56   :  { %2122 = vmatpush3.msra.mxu0 %v4176_v0  ;;  %2108 = vmatpush3.msra.mxu1 %v4177_v2  ;;  %v4182_v0 = vand.u32 4294901760, %v2931_v31  ;;  %v4189_v31 = vand.u32 4294901760, %v2700_v49  ;;  %v4209_v54 = vand.u32 4294901760, %v2922_v39  ;;  %v3238_v39 = vand.u32 4294901760, %v64_v40 }
  0x57   :  { %608 = vmatprep.mubr.f32.mxu0 %v3039_v55  ;;  %2109 = vmatprep.subr.mxu1 %v4178_v19  ;;  %v4203_v55 = vand.u32 4294901760, %v4202_v14 }
  0x58   :  { %2123 = vmatprep.subr.mxu0 %v4179_v24  ;;  %611 = vmatmul.mubr.f32.gmra.mxu0 %v3046_v51  ;;  %4213 = vst [vmem:[#allocation8_spill] sm:$0xff] %v3238_v39 }
  0x59   :  { %2110 = vmatpush3.msra.mxu1 %v2866_v8  ;;  %2124 = vmatpush3.msra.mxu0 %v4180_v26  ;;  %v4207_v26 = vld [vmem:[#allocation25_spill] sm:$0xff] }
  0x5a   :  { %2111 = vmatprep.subr.mxu1 %v2883_v53  ;;  %2125 = vmatprep.subr.mxu0 %v4181_v32 }
  0x5b   :  { %2112 = vmatpush3.msra.mxu1 %v2905_v59  ;;  %715 = vmatprep.mubr.f32.mxu1 %v4182_v0  ;;  %v63_v0 = vld [vmem:[%s3966_s1 + $0x158] sm:$0xff] }
  0x5c   :  { %2126 = vmatpush3.msra.mxu0 %v4183_v36  ;;  %719 = vmatmul.mubr.f32.vlgmr.msra.gmra.mxu1 %v4184_v33 }
  0x5d   :  { %2127 = vmatprep.subr.mxu0 %v4185_v44  ;;  %2157 = vmatprep.subr.mxu1 %v2482_v3  ;;  %v4190_v3 = vand.u32 4294901760, %v3046_v51 }
  0x5e   :  { %2128 = vmatpush3.msra.mxu0 %v4186_v41  ;;  %2158 = vmatpush3.msra.mxu1 %v2484_v4  ;;  %v4192_v4 = vand.u32 4294901760, %v2732_v27  ;;  %v65_v27 = vld [vmem:[%s3966_s1 + $0x168] sm:$0xff]  ;;  %v79_v41 = vld [vmem:[%s3966_s1 + $0x1d8] sm:$0xff] }
  0x5f   :  { %2129 = vmatprep.subr.mxu0 %v4187_v46  ;;  %2159 = vmatprep.subr.mxu1 %v2486_v5  ;;  %v67_v5 = vld [vmem:[%s3966_s1 + $0x178] sm:$0xff] }
  0x60   :  { %726 = vmatprep.mubr.f32.mxu1 %v4188_v60  ;;  %2130 = vmatpush3.msra.mxu0 %v4189_v31  ;;  %v3163_v49 = vand.u32 4294901760, %v67_v5  ;;  %v4214_v60 = vand.u32 4294901760, %v2950_v45  ;;  %v78_v45 = vld [vmem:[%s3966_s1 + $0x1d0] sm:$0xff] }
  0x61   :  { %2160 = vmatpush3.msra.mxu1 %v2497_v10  ;;  %2131 = vmatprep.subr.mxu0 %v4191_v1  ;;  %v4194_v10 = vand.u32 4294901760, %v2775_v29  ;;  %v4215_v1 = vand.u32 4294901760, %v2957_v62 }
  0x62   :  { %730 = vmatmul.mubr.f32.gmra.mxu1 %v4190_v3  ;;  %2161 = vmatprep.subr.mxu1 %v2499_v11  ;;  %v83_v11 = vld [vmem:[%s3966_s1 + $0x1f8] sm:$0xff]  ;;  %v62_v3 = vld [vmem:[%s3966_s1 + $0x150] sm:$0xff] }
  0x63   :  { %2132 = vmatpush3.msra.mxu0 %v4192_v4  ;;  %2162 = vmatpush3.msra.mxu1 %v2501_v12  ;;  %v4196_v12 = vand.u32 4294901760, %v2815_v47  ;;  %v3177_v35 = vand.u32 4294901760, %v83_v11  ;;  %v3196_v47 = vand.u32 4294901760, %v66_v50  ;;  %v3259_v4 = vand.u32 4294901760, %v63_v0 }
  0x64   :  { %2133 = vmatprep.subr.mxu0 %v4193_v9  ;;  %2163 = vmatprep.subr.mxu1 %v2513_v16  ;;  %v82_v16 = vld [vmem:[%s3966_s1 + $0x1f0] sm:$0xff] }
  0x65   :  { %2134 = vmatpush3.msra.mxu0 %v4194_v10  ;;  %2164 = vmatpush3.msra.mxu1 %v2515_v17  ;;  %v4197_v17 = vand.u32 4294901760, %v2827_v61  ;;  %v3192_v61 = vsub.f32 %v67_v5, %v3163_v49  ;;  %v3194_v29 = vand.u32 4294901760, %v82_v16  ;;  %4200 = vst [vmem:[#allocation21_spill] sm:$0xff] %v3196_v47  ;;  %v3215_v24 = vsub.f32 %v83_v11, %v3177_v35  ;;  %v77_v10 = vld [vmem:[%s3966_s1 + $0x1c8] sm:$0xff] }
  0x66   :  { %2135 = vmatprep.subr.mxu0 %v4195_v43  ;;  %2165 = vmatprep.subr.mxu1 %v2517_v18  ;;  %v81_v18 = vld [vmem:[%s3966_s1 + $0x1e8] sm:$0xff]  ;;  %v3224_v32 = vsub.f32 %v66_v50, %v3196_v47  ;;  %4216 = vst [vmem:[#allocation9_spill] sm:$0xff] %v3259_v4  ;;  %v3267_v5 = vand.u32 4294901760, %v79_v41  ;;  %v3286_v43 = vsub.f32 %v64_v40, %v3238_v39  ;;  %v4230_v40 = vld [vmem:[#allocation17_spill] sm:$0xff] }
  0x67   :  { %2136 = vmatpush3.msra.mxu0 %v4196_v12  ;;  %2166 = vmatpush3.msra.mxu1 %v2539_v23  ;;  %v4199_v23 = vand.u32 4294901760, %v4159_v34  ;;  %v3201_v51 = vand.u32 4294901760, %v81_v18  ;;  %v80_v34 = vld [vmem:[%s3966_s1 + $0x1e0] sm:$0xff]  ;;  %v4046_v36 = vand.u32 4294901760, %v3192_v61  ;;  %v3231_v33 = vsub.f32 %v82_v16, %v3194_v29 }
  0x68   :  { %2137 = vmatprep.subr.mxu0 %v4197_v17  ;;  %2167 = vmatprep.subr.mxu1 %v2545_v25  ;;  %v4201_v25 = vld [vmem:[#allocation6_spill] sm:$0xff]  ;;  %v4048_v31 = vand.u32 4294901760, %v3215_v24  ;;  %4218 = vst [vmem:[#allocation10_spill] sm:$0xff] %v3267_v5  ;;  %v4044_v9 = vand.u32 4294901760, %v3224_v32  ;;  %v3288_v12 = vand.u32 4294901760, %v62_v3  ;;  %v4222_v17 = vld [vmem:[#allocation15_spill] sm:$0xff]  ;;  %v3309_v14 = vsub.f32 %v63_v0, %v3259_v4 }
  0x69   :  { %2138 = vmatpush3.msra.mxu0 %v4198_v22  ;;  %2168 = vmatpush3.msra.mxu1 %v4158_v48  ;;  %4204 = vst [vmem:[#allocation5_spill] sm:$0xff] %v3201_v51  ;;  %v3206_v48 = vand.u32 4294901760, %v65_v27  ;;  %v3244_v46 = vsub.f32 %v81_v18, %v3201_v51  ;;  %v4045_v62 = vand.u32 4294901760, %v3231_v33  ;;  %v4223_v18 = vand.u32 4294901760, %v2993_v28 }
  0x6a   :  { %2139 = vmatprep.subr.mxu0 %v4199_v23  ;;  %2169 = vmatprep.subr.mxu1 %v4201_v25  ;;  %4221 = vst [vmem:[#allocation11_spill] sm:$0xff] %v3288_v12  ;;  %v3302_v22 = vand.u32 4294901760, %v78_v45  ;;  %v4225_v23 = vld [vmem:[#allocation30_spill] sm:$0xff]  ;;  %v3335_v0 = vsub.f32 %v79_v41, %v3267_v5  ;;  %v4049_v41 = vand.u32 4294901760, %v3286_v43 }
  0x6b   :  { %2140 = vmatpush3.msra.mxu0 %v4203_v55  ;;  %2170 = vmatpush3.msra.mxu1 %v4161_v13  ;;  %4206 = vst [vmem:[#allocation23_spill] sm:$0xff] %v3206_v48  ;;  %v4208_v13 = vand.u32 4294901760, %v4207_v26  ;;  %v4043_v16 = vand.u32 4294901760, %v3244_v46  ;;  %v4226_v25 = vand.u32 4294901760, %v4225_v23  ;;  %v3311_v55 = vand.u32 4294901760, %v77_v10 }
  0x6c   :  { %2141 = vmatprep.subr.mxu0 %v4205_v57  ;;  %2171 = vmatprep.subr.mxu1 %v4162_v7  ;;  %v4210_v7 = vld [vmem:[#allocation28_spill] sm:$0xff]  ;;  %4224 = vst [vmem:[#allocation12_spill] sm:$0xff] %v3302_v22  ;;  %v76_v57 = vld [vmem:[%s3966_s1 + $0x1c0] sm:$0xff]  ;;  %v3324_v26 = vsub.f32 %v3231_v33, %v4045_v62  ;;  %v3366_v23 = vsub.f32 %v78_v45, %v3302_v22 }
  0x6d   :  { %2142 = vmatpush3.msra.mxu0 %v4208_v13  ;;  %2172 = vmatpush3.msra.mxu1 %v4163_v38  ;;  %v4211_v44 = vand.u32 4294901760, %v4210_v7  ;;  %v3236_v38 = vand.u32 4294901760, %v80_v34  ;;  %4227 = vst [vmem:[#allocation13_spill] sm:$0xff] %v3311_v55  ;;  %v3329_v13 = vsub.f32 %v3224_v32, %v4044_v9  ;;  %v59_v7 = vld [vmem:[%s3966_s1 + $0x138] sm:$0xff]  ;;  %v3397_v62 = vsub.f32 %v3286_v43, %v4049_v41 }
  0x6e   :  { %2143 = vmatprep.subr.mxu0 %v4209_v54  ;;  %2173 = vmatprep.subr.mxu1 %v4164_v58  ;;  %v3250_v58 = vsub.f32 %v65_v27, %v3206_v48  ;;  %v60_v54 = vld [vmem:[%s3966_s1 + $0x140] sm:$0xff] }
  0x6f   :  { %2144 = vmatpush3.msra.mxu0 %v4211_v44  ;;  %4212 = vst [vmem:[#allocation7_spill] sm:$0xff] %v3236_v38  ;;  %2174 = vmatpush3.msra.mxu1 %v4165_v20  ;;  %v4217_v20 = vand.u32 4294901760, %v2974_v42  ;;  %v4219_v42 = vld [vmem:[#allocation29_spill] sm:$0xff]  ;;  %v3292_v50 = vsub.f32 %v80_v34, %v3236_v38  ;;  %v4229_v34 = vld [vmem:[#allocation26_spill] sm:$0xff]  ;;  %v4231_v44 = vld [vmem:[#allocation27_spill] sm:$0xff] }
  0x70   :  { %2145 = vmatprep.subr.mxu0 %v4214_v60  ;;  %2175 = vmatprep.subr.mxu1 %v4166_v6  ;;  %v3272_v6 = vsub.f32 %v3192_v61, %v4046_v36  ;;  %v4220_v11 = vand.u32 4294901760, %v4219_v42  ;;  %v4042_v27 = vand.u32 4294901760, %v3250_v58  ;;  %v4232_v60 = vld [vmem:[#allocation18_spill] sm:$0xff] }
  0x71   :  { %2146 = vmatpush3.msra.mxu0 %v4215_v1  ;;  %2176 = vmatpush3.msra.mxu1 %v4167_v37  ;;  %v61_v37 = vld [vmem:[%s3966_s1 + $0x148] sm:$0xff]  ;;  %v3343_v1 = vsub.f32 %v62_v3, %v3288_v12  ;;  %v4047_v42 = vand.u32 4294901760, %v3292_v50 }
  0x72   :  { %2147 = vmatprep.subr.mxu0 %v4217_v20  ;;  %2177 = vmatprep.subr.mxu1 %v4168_v21  ;;  %v3300_v21 = vsub.f32 %v3215_v24, %v4048_v31  ;;  %v3313_v28 = vand.u32 4294901760, %v61_v37  ;;  %v3348_v20 = vsub.f32 %v3244_v46, %v4043_v16  ;;  %v3358_v3 = vsub.f32 %v3250_v58, %v4042_v27  ;;  %v57_v27 = vld [vmem:[%s3966_s1 + $0x128] sm:$0xff] }
  0x73   :  { %2148 = vmatpush3.msra.mxu0 %v4220_v11  ;;  %2178 = vmatpush3.msra.mxu1 %v4222_v17  ;;  %4233 = vst [vmem:[#allocation16_spill] sm:$0xff] %v3343_v1  ;;  %v3360_v17 = vand.u32 4294901760, %v76_v57  ;;  %v4051_v16 = vand.u32 4294901760, %v3335_v0  ;;  %v3392_v9 = vsub.f32 %v3292_v50, %v4047_v42  ;;  %v4054_v31 = vand.u32 4294901760, %v3366_v23  ;;  %v3476_v11 = vld [vmem:[%s3966_s1 + $0x1a0] sm:$0xff] }
  0x74   :  { %2149 = vmatprep.subr.mxu0 %v4223_v18  ;;  %2179 = vmatprep.subr.mxu1 %v4170_v63  ;;  %4228 = vst [vmem:[#allocation14_spill] sm:$0xff] %v3313_v28  ;;  %v75_v18 = vld [vmem:[%s3966_s1 + $0x1b8] sm:$0xff]  ;;  %v3459_v41 = vand.u32 4294901760, %v57_v27 }
  0x75   :  { %2150 = vmatpush3.msra.mxu0 %v4226_v25  ;;  %896 = vmatprep.mubr.f32.mxu0 %v4229_v34  ;;  %4234 = vst [vmem:[#allocation19_spill] sm:$0xff] %v3360_v17  ;;  %v3373_v25 = vand.u32 4294901760, %v60_v54  ;;  %v3399_v36 = vand.u32 4294901760, %v75_v18  ;;  %v3421_v45 = vsub.f32 %v76_v57, %v3360_v17 }
  0x76   :  { %2180 = vmatpush3.msra.mxu1 %v4230_v40  ;;  %898 = vmatmul.mubr.f32.vlgmr.msra.gmra.mxu0 %v4231_v44  ;;  %v3375_v40 = vand.u32 4294901760, %v59_v7  ;;  %4245 = vst [vmem:[#allocation17_spill] sm:$0xff] %v3459_v41 }
  0x77   :  { %2181 = vmatprep.subr.mxu1 %v4232_v60  ;;  %2195 = vmatprep.subr.mxu0 %v3177_v35  ;;  %4236 = vst [vmem:[#allocation22_spill] sm:$0xff] %v3373_v25  ;;  %v4050_v60 = vand.u32 4294901760, %v3309_v14  ;;  %4239 = vst [vmem:[#allocation25_spill] sm:$0xff] %v3399_v36 }
  0x78   :  { %2182 = vmatpush3.msra.mxu1 %v4173_v15  ;;  %2196 = vmatpush3.msra.mxu0 %v3163_v49  ;;  %v3371_v15 = vsub.f32 %v61_v37, %v3313_v28  ;;  %4237 = vst [vmem:[#allocation6_spill] sm:$0xff] %v3375_v40  ;;  %v3415_v37 = vld [vmem:[%s3966_s1 + $0x1a8] sm:$0xff]  ;;  %4240 = vst [vmem:[#allocation28_spill] sm:$0xff] %v3421_v45  ;;  %v3429_v42 = vsub.f32 %v59_v7, %v3375_v40 }
  0x79   :  { %2183 = vmatprep.subr.mxu1 %v2818_v30  ;;  %2197 = vmatprep.subr.mxu0 %v3194_v29  ;;  %v3384_v30 = vsub.f32 %v77_v10, %v3311_v55  ;;  %v58_v10 = vld [vmem:[%s3966_s1 + $0x130] sm:$0xff]  ;;  %v3434_v63 = vsub.f32 %v3309_v14, %v4050_v60  ;;  %v56_v60 = vld [vmem:[%s3966_s1 + $0x120] sm:$0xff]  ;;  %v3466_v7 = vsub.f32 %v3366_v23, %v4054_v31  ;;  %v55_v31 = vld [vmem:[%s3966_s1 + $0x118] sm:$0xff] }
  0x7a   :  { %4235 = vst [vmem:[#allocation20_spill] sm:$0xff] %v3371_v15  ;;  %903 = vmatprep.mubr.f32.mxu0 %v3026_v52  ;;  %2184 = vmatpush3.msra.mxu1 %v4177_v2  ;;  %v74_v2 = vld [vmem:[%s3966_s1 + $0x1b0] sm:$0xff]  ;;  %4242 = vst [vmem:[#allocation15_spill] sm:$0xff] %v3429_v42 }
  0x7b   :  { %4238 = vst [vmem:[#allocation24_spill] sm:$0xff] %v3384_v30  ;;  %2198 = vmatpush3.msra.mxu0 %v3196_v47  ;;  %2185 = vmatprep.subr.mxu1 %v4178_v19  ;;  %v3426_v19 = vsub.f32 %v60_v54, %v3373_v25  ;;  %v3444_v57 = vand.u32 4294901760, %v74_v2  ;;  %v3446_v54 = vand.u32 4294901760, %v58_v10 }
  0x7c   :  { %905 = vmatmul.mubr.f32.gmra.mxu0 %v3032_v56  ;;  %2199 = vmatprep.subr.mxu0 %v3201_v51  ;;  %v3493_v51 = vand.u32 4294901760, %v56_v60 }
  0x7d   :  { %2186 = vmatpush3.msra.mxu1 %v2866_v8  ;;  %4241 = vst [vmem:[#allocation29_spill] sm:$0xff] %v3426_v19  ;;  %2200 = vmatpush3.msra.mxu0 %v3206_v48  ;;  %v3442_v8 = vsub.f32 %v3335_v0, %v4051_v16  ;;  %4243 = vst [vmem:[#allocation30_spill] sm:$0xff] %v3446_v54  ;;  %v3457_v16 = vand.u32 4294901760, %v3415_v37 }
  0x7e   :  { %2187 = vmatprep.subr.mxu1 %v2883_v53  ;;  %2201 = vmatprep.subr.mxu0 %v3236_v38  ;;  %4249 = vst [vmem:[#allocation18_spill] sm:$0xff] %v3493_v51  ;;  %v4250_v38 = vand.u32 4294901760, %v3300_v21  ;;  %v54_v21 = vld [vmem:[%s3966_s1 + $0x110] sm:$0xff] }
  0x7f   :  { %2188 = vmatpush3.msra.mxu1 %v2905_v59  ;;  %4244 = vst [vmem:[#allocation26_spill] sm:$0xff] %v3457_v16  ;;  %1007 = vmatprep.mubr.f32.mxu1 %v4229_v34  ;;  %v4246_v59 = vand.u32 4294901760, %v3343_v1  ;;  %v3480_v34 = vsub.f32 %v75_v18, %v3399_v36  ;;  %v3526_v18 = vsub.f32 %v74_v2, %v3444_v57  ;;  %v4255_v2 = vand.u32 4294901760, %v3421_v45 }
  0x80   :  { %2202 = vmatpush3.msra.mxu0 %v3238_v39  ;;  %1009 = vmatmul.mubr.f32.vlgmr.msra.gmra.mxu1 %v4231_v44  ;;  %v4248_v39 = vand.u32 4294901760, %v3371_v15  ;;  %v1293_v44 = vand.u32 4294901760, %v3442_v8  ;;  %v3521_v8 = vand.u32 4294901760, %v3476_v11 }
  0x81   :  { %v3471_v53 = vsub.f32 %v3343_v1, %v4246_v59  ;;  %4247 = vst [vmem:[#allocation27_spill] sm:$0xff] %v3480_v34  ;;  %2203 = vmatprep.subr.mxu0 %v3267_v5  ;;  %2233 = vmatprep.subr.mxu1 %v4250_v38  ;;  %v3501_v5 = vsub.f32 %v58_v10, %v3446_v54  ;;  %v4251_v59 = vand.u32 4294901760, %v3384_v30  ;;  %v4252_v38 = vand.u32 4294901760, %v3272_v6  ;;  %v15_v6 = vld [vmem:[%s3965_s0 + $0x18] sm:$0xff] }
  0x82   :  { %v3491_v48 = vsub.f32 %v3371_v15, %v4248_v39  ;;  %2204 = vmatpush3.msra.mxu0 %v3259_v4  ;;  %v3511_v39 = vld [vmem:[%s3966_s1 + $0x198] sm:$0xff]  ;;  %v3518_v10 = vsub.f32 %v57_v27, %v3459_v41  ;;  %4253 = vst [vmem:[#allocation31_spill] sm:$0xff] %v3526_v18  ;;  %1014 = vmatprep.mubr.f32.mxu1 %v3026_v52  ;;  %v1300_v27 = vand.u32 4294901760, %v3466_v7  ;;  %v70_v15 = vld [vmem:[%s3966_s1 + $0x190] sm:$0xff]  ;;  %v3579_v52 = vld [vmem:[%s3966_s1 + $0x188] sm:$0xff]  ;;  %v4267_v1 = vand.u32 4294901760, %v3392_v9 }
  0x83   :  { %v3506_v47 = vsub.f32 %v3384_v30, %v4251_v59  ;;  %2234 = vmatpush3.msra.mxu1 %v4252_v38  ;;  %2205 = vmatprep.subr.mxu0 %v3302_v22  ;;  %v3523_v59 = vand.u32 4294901760, %v55_v31  ;;  %v4254_v38 = vand.u32 4294901760, %v3324_v26  ;;  %v3542_v4 = vsub.f32 %v3421_v45, %v4255_v2  ;;  %v14_v30 = vld [vmem:[%s3965_s0 + $0x10] sm:$0xff]  ;;  %v19_v45 = vld [vmem:[%s3965_s0 + $0x40] sm:$0xff] }
  0x84   :  { %2206 = vmatpush3.msra.mxu0 %v3288_v12  ;;  %v4256_v26 = vand.u32 4294901760, %v3329_v13  ;;  %v3553_v7 = vsub.f32 %v56_v60, %v3493_v51  ;;  %v3561_v22 = vand.u32 4294901760, %v3511_v39  ;;  %1016 = vmatmul.mubr.f32.gmra.mxu1 %v3032_v56  ;;  %v4260_v60 = vand.u32 4294901760, %v3429_v42  ;;  %v53_v56 = vld [vmem:[%s3966_s1 + $0x108] sm:$0xff] }
  0x85   :  { %2235 = vmatprep.subr.mxu1 %v4254_v38  ;;  %v4258_v38 = vand.u32 4294901760, %v3426_v19  ;;  %2207 = vmatprep.subr.mxu0 %v3311_v55  ;;  %v1307_v13 = vand.u32 4294901760, %v3506_v47  ;;  %v3584_v12 = vand.u32 4294901760, %v15_v6  ;;  %v4262_v47 = vand.u32 4294901760, %v3348_v20 }
  0x86   :  { %2236 = vmatpush3.msra.mxu1 %v4256_v26  ;;  %4257 = vst [vmem:[#allocation32_spill] sm:$0xff] %v3553_v7  ;;  %4259 = vst [vmem:[#allocation33_spill] sm:$0xff] %v3561_v22  ;;  %v3572_v26 = vsub.f32 %v3429_v42, %v4260_v60  ;;  %2208 = vmatpush3.msra.mxu0 %v3313_v28  ;;  %v3590_v60 = vsub.f32 %v55_v31, %v3523_v59  ;;  %v4264_v20 = vand.u32 4294901760, %v3358_v3  ;;  %v18_v28 = vld [vmem:[%s3965_s0 + $0x38] sm:$0xff] }
  0x87   :  { %v3558_v2 = vsub.f32 %v3426_v19, %v4258_v38  ;;  %v3574_v38 = vand.u32 4294901760, %v54_v21  ;;  %4261 = vst [vmem:[#allocation34_spill] sm:$0xff] %v3584_v12  ;;  %2237 = vmatprep.subr.mxu1 %v4262_v47  ;;  %v3595_v42 = vsub.f32 %v3415_v37, %v3457_v16  ;;  %v3597_v19 = vand.u32 4294901760, %v14_v30  ;;  %2209 = vmatprep.subr.mxu0 %v3360_v17 }
  0x88   :  { %2238 = vmatpush3.msra.mxu1 %v4264_v20  ;;  %v1314_v31 = vand.u32 4294901760, %v3542_v4  ;;  %v4265_v47 = vand.u32 4294901760, %v3480_v34  ;;  %v3611_v37 = vand.u32 4294901760, %v70_v15  ;;  %2210 = vmatpush3.msra.mxu0 %v3373_v25  ;;  %v3619_v20 = vand.u32 4294901760, %v3579_v52  ;;  %v52_v25 = vld [vmem:[%s3966_s1 + $0x100] sm:$0xff] }
  0x89   :  { %4263 = vst [vmem:[#allocation35_spill] sm:$0xff] %v3597_v19  ;;  %2239 = vmatprep.subr.mxu1 %v4267_v1  ;;  %v1202_v3 = vand.u32 4294901760, %v3558_v2  ;;  %v3621_v4 = vand.u32 4294901760, %v53_v56  ;;  %v4268_v9 = vand.u32 4294901760, %v3397_v62  ;;  %2211 = vmatprep.subr.mxu0 %v3399_v36  ;;  %v1209_v1 = vand.u32 4294901760, %v3572_v26 }
  0x8a   :  { %v3609_v55 = vsub.f32 %v3480_v34, %v4265_v47  ;;  %4266 = vst [vmem:[#allocation36_spill] sm:$0xff] %v3611_v37  ;;  %v3625_v47 = vsub.f32 %v3476_v11, %v3521_v8  ;;  %v3635_v2 = vsub.f32 %v54_v21, %v3574_v38  ;;  %v3641_v11 = vsub.f32 %v15_v6, %v3584_v12  ;;  %v68_v21 = vld [vmem:[%s3966_s1 + $0x180] sm:$0xff] }
  0x8b   :  { %2240 = vmatpush3.msra.mxu1 %v4268_v9  ;;  %v3643_v17 = vand.u32 4294901760, %v19_v45  ;;  %2212 = vmatpush3.msra.mxu0 %v3375_v40  ;;  %v4270_v62 = vand.u32 4294901760, %v3526_v18  ;;  %v3654_v36 = vsub.f32 %v14_v30, %v3597_v19  ;;  %v3658_v6 = vsub.f32 %v3511_v39, %v3561_v22 }
  0x8c   :  { %2241 = vmatprep.subr.mxu1 %v1293_v44  ;;  %v4271_v44 = vand.u32 4294901760, %v3434_v63  ;;  %2213 = vmatprep.subr.mxu0 %v3444_v57  ;;  %v4272_v26 = vand.u32 4294901760, %v3501_v5  ;;  %v3668_v34 = vand.u32 4294901760, %v18_v28  ;;  %v3672_v30 = vsub.f32 %v53_v56, %v3621_v4 }
  0x8d   :  { %4269 = vst [vmem:[#allocation37_spill] sm:$0xff] %v3643_v17  ;;  %v1327_v9 = vsub.f32 %v3526_v18, %v4270_v62  ;;  %v1321_v62 = vand.u32 4294901760, %v3609_v55  ;;  %2214 = vmatpush3.msra.mxu0 %v3446_v54  ;;  %v3675_v39 = vand.u32 4294901760, %v52_v25  ;;  %v3678_v55 = vsub.f32 %v70_v15, %v3611_v37  ;;  %1373 = vmatprep.mubr.f32.mxu1 %v3584_v12  ;;  %v4317_v12 = vld [vmem:[#allocation30_spill] sm:$0xff] }
  0x8e   :  { %2242 = vmatpush3.msra.mxu1 %v4271_v44  ;;  %v1215_v40 = vsub.f32 %v3501_v5, %v4272_v26  ;;  %4273 = vst [vmem:[#allocation38_spill] sm:$0xff] %v3668_v34  ;;  %v4275_v44 = vand.u32 4294901760, %v3471_v53  ;;  %2215 = vmatprep.subr.mxu0 %v3457_v16  ;;  %v3683_v26 = vand.u32 4294901760, %v68_v21  ;;  %v3688_v56 = vsub.f32 %v19_v45, %v3643_v17 }
  0x8f   :  { %2243 = vmatprep.subr.mxu1 %v1300_v27  ;;  %4274 = vst [vmem:[#allocation39_spill] sm:$0xff] %v3675_v39  ;;  %v4103_v27 = vand.u32 4294901760, %v3641_v11  ;;  %2216 = vmatpush3.msra.mxu0 %v3459_v41  ;;  %v1328_v63 = vand.u32 4294901760, %v1327_v9  ;;  %v4276_v15 = vand.u32 4294901760, %v3595_v42  ;;  %v4277_v54 = vand.u32 4294901760, %v3491_v48 }
  0x90   :  { %2244 = vmatpush3.msra.mxu1 %v4275_v44  ;;  %2217 = vmatprep.subr.mxu0 %v3521_v8  ;;  %v4278_v45 = vand.u32 4294901760, %v3518_v10  ;;  %v3704_v9 = vsub.f32 %v18_v28, %v3668_v34  ;;  %v1216_v48 = vand.u32 4294901760, %v1215_v40  ;;  %v3715_v44 = vsub.f32 %v52_v25, %v3675_v39 }
  0x91   :  { %2245 = vmatprep.subr.mxu1 %v1307_v13  ;;  %v1334_v53 = vsub.f32 %v3595_v42, %v4276_v15  ;;  %v3708_v15 = vsub.f32 %v3579_v52, %v3619_v20  ;;  %2218 = vmatpush3.msra.mxu0 %v3493_v51  ;;  %v1120_v28 = vsub.f32 %v3641_v11, %v4103_v27  ;;  %v4281_v52 = vand.u32 4294901760, %v3553_v7 }
  0x92   :  { %2246 = vmatpush3.msra.mxu1 %v4277_v54  ;;  %v1222_v13 = vsub.f32 %v3518_v10, %v4278_v45  ;;  %v4279_v54 = vand.u32 4294901760, %v3625_v47  ;;  %4280 = vst [vmem:[#allocation40_spill] sm:$0xff] %v3715_v44  ;;  %2219 = vmatprep.subr.mxu0 %v3561_v22  ;;  %v4284_v18 = vand.u32 4294901760, %v3658_v6 }
  0x93   :  { %2247 = vmatprep.subr.mxu1 %v1314_v31  ;;  %v1229_v40 = vsub.f32 %v3553_v7, %v4281_v52  ;;  %2220 = vmatpush3.msra.mxu0 %v3523_v59  ;;  %v1335_v25 = vand.u32 4294901760, %v1334_v53 }
  0x94   :  { %v1341_v16 = vsub.f32 %v3625_v47, %v4279_v54  ;;  %2248 = vmatpush3.msra.mxu1 %v1202_v3  ;;  %v3727_v54 = vsub.f32 %v68_v21, %v3683_v26  ;;  %v4283_v3 = vand.u32 4294901760, %v3654_v36  ;;  %v1348_v27 = vsub.f32 %v3658_v6, %v4284_v18  ;;  %2221 = vmatprep.subr.mxu0 %v3611_v37 }
  0x95   :  { %2249 = vmatprep.subr.mxu1 %v1321_v62  ;;  %v1223_v52 = vand.u32 4294901760, %v1222_v13  ;;  %v4285_v21 = vand.u32 4294901760, %v3590_v60  ;;  %2222 = vmatpush3.msra.mxu0 %v3574_v38  ;;  %v4286_v18 = vand.u32 4294901760, %v3678_v55  ;;  %v1121_v13 = vand.u32 4294901760, %v1120_v28 }
  0x96   :  { %4282 = vst [vmem:[#allocation41_spill] sm:$0xff] %v3727_v54  ;;  %v1126_v45 = vsub.f32 %v3654_v36, %v4283_v3  ;;  %2250 = vmatpush3.msra.mxu1 %v1209_v1  ;;  %v1342_v3 = vand.u32 4294901760, %v1341_v16  ;;  %2223 = vmatprep.subr.mxu0 %v3619_v20  ;;  %v1230_v37 = vand.u32 4294901760, %v1229_v40  ;;  %v1349_v31 = vand.u32 4294901760, %v1348_v27 }
  0x97   :  { %v1236_v62 = vsub.f32 %v3590_v60, %v4285_v21  ;;  %2251 = vmatprep.subr.mxu1 %v1328_v63  ;;  %v1355_v22 = vsub.f32 %v3678_v55, %v4286_v18  ;;  %v4287_v21 = vand.u32 4294901760, %v3688_v56  ;;  %2224 = vmatpush3.msra.mxu0 %v3621_v4  ;;  %v4288_v18 = vand.u32 4294901760, %v3635_v2 }
  0x98   :  { %2252 = vmatpush3.msra.mxu1 %v1216_v48  ;;  %v1127_v16 = vand.u32 4294901760, %v1126_v45  ;;  %2225 = vmatprep.subr.mxu0 %v3683_v26  ;;  %v4289_v40 = vand.u32 4294901760, %v3704_v9  ;;  %v4291_v45 = vand.u32 4294901760, %v3672_v30 }
  0x99   :  { %v1135_v53 = vsub.f32 %v3688_v56, %v4287_v21  ;;  %2253 = vmatprep.subr.mxu1 %v1335_v25  ;;  %v1243_v1 = vsub.f32 %v3635_v2, %v4288_v18  ;;  %v1237_v28 = vand.u32 4294901760, %v1236_v62  ;;  %v4290_v25 = vand.u32 4294901760, %v3708_v15  ;;  %2226 = vmatpush3.msra.mxu0 %v3675_v39 }
  0x9a   :  { %2254 = vmatpush3.msra.mxu1 %v1223_v52  ;;  %v1141_v21 = vsub.f32 %v3704_v9, %v4289_v40  ;;  %v1356_v27 = vand.u32 4294901760, %v1355_v22  ;;  %v1250_v18 = vsub.f32 %v3672_v30, %v4291_v45  ;;  %1122 = vmatprep.mubr.f32.mxu0 %v1121_v13  ;;  %v4292_v62 = vand.u32 4294901760, %v3727_v54  ;;  %v4296_v13 = vld [vmem:[#allocation24_spill] sm:$0xff] }
  0x9b   :  { %v1362_v63 = vsub.f32 %v3708_v15, %v4290_v25  ;;  %2255 = vmatprep.subr.mxu1 %v1342_v3  ;;  %v1136_v52 = vand.u32 4294901760, %v1135_v53  ;;  %1128 = vmatmul.mubr.f32.vlgmr.msra.gmra.mxu0 %v1127_v16  ;;  %v1244_v40 = vand.u32 4294901760, %v1243_v1  ;;  %v4293_v25 = vand.u32 4294901760, %v3715_v44  ;;  %v4295_v1 = vld [vmem:[#allocation21_spill] sm:$0xff]  ;;  %v4298_v16 = vld [vmem:[#allocation20_spill] sm:$0xff] }
  0x9c   :  { %2256 = vmatpush3.msra.mxu1 %v1230_v37  ;;  %v1369_v48 = vsub.f32 %v3727_v54, %v4292_v62  ;;  %2271 = vmatprep.subr.mxu0 %v3215_v24  ;;  %v1142_v22 = vand.u32 4294901760, %v1141_v21  ;;  %v1251_v37 = vand.u32 4294901760, %v1250_v18  ;;  %v4301_v21 = vld [vmem:[#allocation7_spill] sm:$0xff]  ;;  %v4303_v45 = vld [vmem:[#allocation8_spill] sm:$0xff] }
  0x9d   :  { %2257 = vmatprep.subr.mxu1 %v1349_v31  ;;  %v1257_v3 = vsub.f32 %v3715_v44, %v4293_v25  ;;  %v1363_v39 = vand.u32 4294901760, %v1362_v63  ;;  %2272 = vmatpush3.msra.mxu0 %v3192_v61  ;;  %v4297_v63 = vld [vmem:[#allocation5_spill] sm:$0xff]  ;;  %v4304_v18 = vld [vmem:[#allocation27_spill] sm:$0xff] }
  0x9e   :  { %2258 = vmatpush3.msra.mxu1 %v1237_v28  ;;  %2273 = vmatprep.subr.mxu0 %v3231_v33  ;;  %v1370_v53 = vand.u32 4294901760, %v1369_v48  ;;  %v4299_v48 = vld [vmem:[#allocation23_spill] sm:$0xff]  ;;  %v4300_v28 = vld [vmem:[#allocation28_spill] sm:$0xff] }
  0x9f   :  { %2259 = vmatprep.subr.mxu1 %v1356_v27  ;;  %1137 = vmatprep.mubr.f32.mxu0 %v1136_v52  ;;  %v1258_v31 = vand.u32 4294901760, %v1257_v3  ;;  %v4302_v27 = vld [vmem:[#allocation29_spill] sm:$0xff]  ;;  %v4305_v52 = vld [vmem:[#allocation10_spill] sm:$0xff]  ;;  %v4306_v62 = vld [vmem:[#allocation15_spill] sm:$0xff] }
  0xa0   :  { %2260 = vmatpush3.msra.mxu1 %v1244_v40  ;;  %2274 = vmatpush3.msra.mxu0 %v3224_v32  ;;  %v4307_v40 = vld [vmem:[#allocation9_spill] sm:$0xff]  ;;  %v4308_v25 = vld [vmem:[#allocation31_spill] sm:$0xff]  ;;  %v4309_v3 = vld [vmem:[#allocation12_spill] sm:$0xff] }
  0xa1   :  { %1143 = vmatmul.mubr.f32.gmra.mxu0 %v1142_v22  ;;  %2261 = vmatprep.subr.mxu1 %v1363_v39  ;;  %v4294_v39 = vld [vmem:[#allocation16_spill] sm:$0xff]  ;;  %v4310_v22 = vld [vmem:[#allocation11_spill] sm:$0xff] }
  0xa2   :  { %2275 = vmatprep.subr.mxu0 %v3244_v46  ;;  %2262 = vmatpush3.msra.mxu1 %v1251_v37  ;;  %v4311_v37 = vld [vmem:[#allocation13_spill] sm:$0xff] }
  0xa3   :  { %2276 = vmatpush3.msra.mxu0 %v3250_v58  ;;  %2263 = vmatprep.subr.mxu1 %v1370_v53  ;;  %v4312_v53 = vld [vmem:[#allocation14_spill] sm:$0xff] }
  0xa4   :  { %2277 = vmatprep.subr.mxu0 %v3292_v50  ;;  %2264 = vmatpush3.msra.mxu1 %v1258_v31  ;;  %v4313_v31 = vld [vmem:[#allocation19_spill] sm:$0xff] }
  0xa5   :  { %2278 = vmatpush3.msra.mxu0 %v3286_v43  ;;  %1375 = vmatmul.mubr.f32.vlgmr.msra.gmra.mxu1 %v3597_v19  ;;  %v4316_v19 = vld [vmem:[#allocation6_spill] sm:$0xff] }
  0xa6   :  { %2279 = vmatprep.subr.mxu0 %v3335_v0  ;;  %2309 = vmatprep.subr.mxu1 %v3177_v35 }
  0xa7   :  { %2280 = vmatpush3.msra.mxu0 %v3309_v14  ;;  %2310 = vmatpush3.msra.mxu1 %v3163_v49 }
  0xa8   :  { %2281 = vmatprep.subr.mxu0 %v3366_v23  ;;  %2311 = vmatprep.subr.mxu1 %v3194_v29 }
  0xa9   :  { %1380 = vmatprep.mubr.f32.mxu1 %v3643_v17  ;;  %2282 = vmatpush3.msra.mxu0 %v4294_v39  ;;  %v4315_v17 = vld [vmem:[#allocation25_spill] sm:$0xff] }
  0xaa   :  { %2312 = vmatpush3.msra.mxu1 %v4295_v1  ;;  %2283 = vmatprep.subr.mxu0 %v4296_v13 }
  0xab   :  { %1382 = vmatmul.mubr.f32.gmra.mxu1 %v3668_v34  ;;  %2313 = vmatprep.subr.mxu1 %v4297_v63  ;;  %v4314_v34 = vld [vmem:[#allocation22_spill] sm:$0xff] }
  0xac   :  { %2284 = vmatpush3.msra.mxu0 %v4298_v16  ;;  %2314 = vmatpush3.msra.mxu1 %v4299_v48 }
  0xad   :  { %2285 = vmatprep.subr.mxu0 %v4300_v28  ;;  %2315 = vmatprep.subr.mxu1 %v4301_v21 }
  0xae   :  { %2286 = vmatpush3.msra.mxu0 %v4302_v27  ;;  %2316 = vmatpush3.msra.mxu1 %v4303_v45 }
  0xaf   :  { %2287 = vmatprep.subr.mxu0 %v4304_v18  ;;  %2317 = vmatprep.subr.mxu1 %v4305_v52 }
  0xb0   :  { %2288 = vmatpush3.msra.mxu0 %v4306_v62  ;;  %2318 = vmatpush3.msra.mxu1 %v4307_v40 }
  0xb1   :  { %2289 = vmatprep.subr.mxu0 %v4308_v25  ;;  %2319 = vmatprep.subr.mxu1 %v4309_v3 }
  0xb2   :  { %2290 = vmatpush3.msra.mxu0 %v3501_v5  ;;  %2320 = vmatpush3.msra.mxu1 %v4310_v22 }
  0xb3   :  { %2291 = vmatprep.subr.mxu0 %v3595_v42  ;;  %2321 = vmatprep.subr.mxu1 %v4311_v37 }
  0xb4   :  { %2292 = vmatpush3.msra.mxu0 %v3518_v10  ;;  %2322 = vmatpush3.msra.mxu1 %v4312_v53 }
  0xb5   :  { %2293 = vmatprep.subr.mxu0 %v3625_v47  ;;  %2323 = vmatprep.subr.mxu1 %v4313_v31 }
  0xb6   :  { %2294 = vmatpush3.msra.mxu0 %v3553_v7  ;;  %2324 = vmatpush3.msra.mxu1 %v4314_v34  ;;  %v4318_v7 = vld [vmem:[#allocation26_spill] sm:$0xff] }
  0xb7   :  { %2295 = vmatprep.subr.mxu0 %v3658_v6  ;;  %2325 = vmatprep.subr.mxu1 %v4315_v17 }
  0xb8   :  { %2296 = vmatpush3.msra.mxu0 %v3590_v60  ;;  %2326 = vmatpush3.msra.mxu1 %v4316_v19 }
  0xb9   :  { %2297 = vmatprep.subr.mxu0 %v3678_v55  ;;  %2327 = vmatprep.subr.mxu1 %v3444_v57 }
  0xba   :  { %2298 = vmatpush3.msra.mxu0 %v3635_v2  ;;  %2328 = vmatpush3.msra.mxu1 %v4317_v12  ;;  %v4319_v12 = vld [vmem:[#allocation33_spill] sm:$0xff] }
  0xbb   :  { %2299 = vmatprep.subr.mxu0 %v3708_v15  ;;  %2329 = vmatprep.subr.mxu1 %v4318_v7  ;;  %v4320_v7 = vand.u32 4294901760, %v3215_v24  ;;  %v4325_v24 = vand.u32 4294901760, %v3244_v46  ;;  %v4331_v46 = vand.u32 4294901760, %v3654_v36 }
  0xbc   :  { %2300 = vmatpush3.msra.mxu0 %v3672_v30  ;;  %2330 = vmatpush3.msra.mxu1 %v3459_v41  ;;  %v4321_v41 = vand.u32 4294901760, %v3192_v61  ;;  %v4326_v61 = vand.u32 4294901760, %v3250_v58  ;;  %v4333_v58 = vand.u32 4294901760, %v3309_v14  ;;  %v4338_v14 = vand.u32 4294901760, %v4296_v13  ;;  %v4349_v13 = vld [vmem:[#allocation32_spill] sm:$0xff] }
  0xbd   :  { %2301 = vmatprep.subr.mxu0 %v3727_v54  ;;  %2331 = vmatprep.subr.mxu1 %v3521_v8  ;;  %v4322_v54 = vld [vmem:[#allocation36_spill] sm:$0xff] }
  0xbe   :  { %2302 = vmatpush3.msra.mxu0 %v3715_v44  ;;  %1517 = vmatprep.mubr.f32.mxu0 %v3641_v11  ;;  %v4323_v44 = vand.u32 4294901760, %v3231_v33  ;;  %v4327_v33 = vand.u32 4294901760, %v3292_v50  ;;  %v4334_v50 = vand.u32 4294901760, %v3366_v23  ;;  %v4342_v23 = vand.u32 4294901760, %v4304_v18 }
  0xbf   :  { %2332 = vmatpush3.msra.mxu1 %v3493_v51  ;;  %1520 = vmatmul.mubr.f32.vlgmr.msra.gmra.mxu0 %v3654_v36  ;;  %v4324_v51 = vand.u32 4294901760, %v3224_v32  ;;  %v4330_v32 = vand.u32 4294901760, %v3286_v43  ;;  %v4335_v43 = vand.u32 4294901760, %v3688_v56  ;;  %v4336_v36 = vand.u32 4294901760, %v4294_v39 }
  0xc0   :  { %2333 = vmatprep.subr.mxu1 %v4319_v12  ;;  %2347 = vmatprep.subr.mxu0 %v4320_v7  ;;  %v4332_v7 = vand.u32 4294901760, %v3335_v0  ;;  %v4341_v0 = vand.u32 4294901760, %v4302_v27  ;;  %v4347_v39 = vand.u32 4294901760, %v3518_v10  ;;  %v4352_v10 = vand.u32 4294901760, %v3590_v60  ;;  %v4359_v60 = vld [vmem:[#allocation17_spill] sm:$0xff] }
  0xc1   :  { %2334 = vmatpush3.msra.mxu1 %v3523_v59  ;;  %2348 = vmatpush3.msra.mxu0 %v4321_v41  ;;  %v4328_v41 = vld [vmem:[#allocation39_spill] sm:$0xff] }
  0xc2   :  { %2335 = vmatprep.subr.mxu1 %v4322_v54  ;;  %2349 = vmatprep.subr.mxu0 %v4323_v44  ;;  %v4345_v44 = vand.u32 4294901760, %v3501_v5  ;;  %v4350_v5 = vand.u32 4294901760, %v4349_v13 }
  0xc3   :  { %1526 = vmatprep.mubr.f32.mxu0 %v3688_v56  ;;  %2336 = vmatpush3.msra.mxu1 %v3574_v38  ;;  %v4344_v56 = vand.u32 4294901760, %v4308_v25 }
  0xc4   :  { %2350 = vmatpush3.msra.mxu0 %v4324_v51  ;;  %2337 = vmatprep.subr.mxu1 %v3619_v20  ;;  %v4329_v51 = vand.u32 4294901760, %v3641_v11  ;;  %v4343_v11 = vand.u32 4294901760, %v4306_v62 }
  0xc5   :  { %1529 = vmatmul.mubr.f32.gmra.mxu0 %v3704_v9  ;;  %2351 = vmatprep.subr.mxu0 %v4325_v24 }
  0xc6   :  { %2338 = vmatpush3.msra.mxu1 %v3621_v4  ;;  %2352 = vmatpush3.msra.mxu0 %v4326_v61 }
  0xc7   :  { %2339 = vmatprep.subr.mxu1 %v3683_v26  ;;  %2353 = vmatprep.subr.mxu0 %v4327_v33 }
  0xc8   :  { %2340 = vmatpush3.msra.mxu1 %v4328_v41  ;;  %1633 = vmatprep.mubr.f32.mxu1 %v4329_v51 }
  0xc9   :  { %2354 = vmatpush3.msra.mxu0 %v4330_v32  ;;  %1637 = vmatmul.mubr.f32.vlgmr.msra.gmra.mxu1 %v4331_v46  ;;  %v90_v46 = vpop.permute.xlu0 %89 }
  0xca   :  { %2355 = vmatprep.subr.mxu0 %v4332_v7  ;;  %2385 = vmatprep.subr.mxu1 %v3177_v35  ;;  %v4337_v35 = vand.u32 4294901760, %v3704_v9  ;;  %v4346_v9 = vand.u32 4294901760, %v3595_v42  ;;  %v4351_v42 = vand.u32 4294901760, %v3658_v6  ;;  %v4357_v6 = vld [vmem:[#allocation26_spill] sm:$0xff] }
  0xcb   :  { %2356 = vmatpush3.msra.mxu0 %v4333_v58  ;;  %2386 = vmatpush3.msra.mxu1 %v3163_v49  ;;  %v4339_v49 = vand.u32 4294901760, %v4298_v16  ;;  %v4355_v16 = vld [vmem:[#allocation30_spill] sm:$0xff] }
  0xcc   :  { %2357 = vmatprep.subr.mxu0 %v4334_v50  ;;  %2387 = vmatprep.subr.mxu1 %v3194_v29  ;;  %v4340_v29 = vand.u32 4294901760, %v4300_v28  ;;  %v4365_v28 = vld [vmem:[#allocation18_spill] sm:$0xff]  ;;  %v1966_v50 = vld [vmem:[%s3966_s1 + $0x200] ss:$0 sm:$0xff]  ;;  %s2455_s1 = smov [#allocation2]  }
  0xcd   :  { %1644 = vmatprep.mubr.f32.mxu1 %v4335_v43  ;;  %2358 = vmatpush3.msra.mxu0 %v4336_v36  ;;  %v95_v43 = vpop.permute.xlu0 %94  ;;  %s1955_s18 = sshll.u32 %s2455_s1, 4  ;;  %s1956_s18 = int_to_ptr.vmem [resolvable:$true] %s1955_s18 }
  0xce   :  { %2388 = vmatpush3.msra.mxu1 %v4295_v1  ;;  %2359 = vmatprep.subr.mxu0 %v4338_v14  ;;  %v4348_v1 = vand.u32 4294901760, %v3625_v47  ;;  %v4353_v47 = vand.u32 4294901760, %v3678_v55  ;;  %v101_v14 = vmul.f32 %v1966_v50, %v90_v46  ;;  %s2432_s19 = scalar_lea.vmem %s1956_s18, 256  ;;  %p2437_p1 = scmp.lt.s32.totalorder %s1956_s18, %s1956_s18 }
  0xcf   :  { %1648 = vmatmul.mubr.f32.gmra.mxu1 %v4337_v35  ;;  %2389 = vmatprep.subr.mxu1 %v4297_v63  ;;  %v4354_v63 = vand.u32 4294901760, %v3635_v2  ;;  %p2433_p0 = scmp.ne.s32.totalorder %s1956_s18, %s2432_s19  ;;  %p2438_p2 = scmp.lt.s32.totalorder %s2432_s19, %s2432_s19 }
  0xd0   :  { %2360 = vmatpush3.msra.mxu0 %v4339_v49  ;;  %2390 = vmatpush3.msra.mxu1 %v4299_v48  ;;  %v4364_v48 = vld [vmem:[#allocation34_spill] sm:$0xff] }
  0xd1   :  { %2361 = vmatprep.subr.mxu0 %v4340_v29  ;;  %2391 = vmatprep.subr.mxu1 %v4301_v21  ;;  %p2439_p3 = por %p2438_p2, %p2437_p1 }
  0xd2   :  { %2362 = vmatpush3.msra.mxu0 %v4341_v0  ;;  %2392 = vmatpush3.msra.mxu1 %v4303_v45 }
  0xd3   :  { %2363 = vmatprep.subr.mxu0 %v4342_v23  ;;  %2393 = vmatprep.subr.mxu1 %v4305_v52  ;;  %v102_v23 = vmul.f32 %v1966_v50, %v95_v43  ;;  %p2440_p4 = pnand %p2439_p3, %p2433_p0 }
  0xd4   :  { %2364 = vmatpush3.msra.mxu0 %v4343_v11  ;;  %2394 = vmatpush3.msra.mxu1 %v4307_v40 }
  0xd5   :  { %2365 = vmatprep.subr.mxu0 %v4344_v56  ;;  %2395 = vmatprep.subr.mxu1 %v4309_v3 }
  0xd6   :  { %2366 = vmatpush3.msra.mxu0 %v4345_v44  ;;  %2396 = vmatpush3.msra.mxu1 %v4310_v22 }
  0xd7   :  { %2367 = vmatprep.subr.mxu0 %v4346_v9  ;;  %2397 = vmatprep.subr.mxu1 %v4311_v37 }
  0xd8   :  { %2368 = vmatpush3.msra.mxu0 %v4347_v39  ;;  %2398 = vmatpush3.msra.mxu1 %v4312_v53 }
  0xd9   :  { %2369 = vmatprep.subr.mxu0 %v4348_v1  ;;  %2399 = vmatprep.subr.mxu1 %v4313_v31 }
  0xda   :  { %2370 = vmatpush3.msra.mxu0 %v4350_v5  ;;  %2400 = vmatpush3.msra.mxu1 %v4314_v34  ;;  %v4356_v34 = vand.u32 4294901760, %v3708_v15  ;;  %v4366_v15 = vld [vmem:[#allocation35_spill] sm:$0xff] }
  0xdb   :  { %2371 = vmatprep.subr.mxu0 %v4351_v42  ;;  %2401 = vmatprep.subr.mxu1 %v4315_v17  ;;  %v4358_v17 = vand.u32 4294901760, %v3672_v30  ;;  %v4367_v30 = vld [vmem:[#allocation37_spill] sm:$0xff] }
  0xdc   :  { %2372 = vmatpush3.msra.mxu0 %v4352_v10  ;;  %2402 = vmatpush3.msra.mxu1 %v4316_v19  ;;  %v4360_v19 = vld [vmem:[#allocation41_spill] sm:$0xff] }
  0xdd   :  { %2373 = vmatprep.subr.mxu0 %v4353_v47  ;;  %2403 = vmatprep.subr.mxu1 %v3444_v57  ;;  %v4361_v55 = vand.u32 4294901760, %v4360_v19  ;;  %v4362_v57 = vld [vmem:[#allocation40_spill] sm:$0xff] }
  0xde   :  { %2374 = vmatpush3.msra.mxu0 %v4354_v63  ;;  %2404 = vmatpush3.msra.mxu1 %v4355_v16  ;;  %v4363_v2 = vand.u32 4294901760, %v4362_v57 }
  0xdf   :  { %2375 = vmatprep.subr.mxu0 %v4356_v34  ;;  %2405 = vmatprep.subr.mxu1 %v4357_v6 }
  0xe0   :  { %2376 = vmatpush3.msra.mxu0 %v4358_v17  ;;  %2406 = vmatpush3.msra.mxu1 %v4359_v60 }
  0xe1   :  { %2377 = vmatprep.subr.mxu0 %v4361_v55  ;;  %2407 = vmatprep.subr.mxu1 %v3521_v8  ;;  %v4368_v8 = vld [vmem:[#allocation38_spill] sm:$0xff] }
  0xe2   :  { %2378 = vmatpush3.msra.mxu0 %v4363_v2  ;;  %1814 = vmatprep.mubr.f32.mxu0 %v4364_v48 }
  0xe3   :  { %2408 = vmatpush3.msra.mxu1 %v4365_v28  ;;  %1816 = vmatmul.mubr.f32.vlgmr.msra.gmra.mxu0 %v4366_v15 }
  0xe4   :  { %2409 = vmatprep.subr.mxu1 %v4319_v12  ;;  %1821 = vmatprep.mubr.f32.mxu0 %v4367_v30 }
  0xe5   :  { %2410 = vmatpush3.msra.mxu1 %v3523_v59  ;;  %1925 = vmatprep.mubr.f32.mxu1 %v4364_v48 }
  0xe6   :  { %2411 = vmatprep.subr.mxu1 %v4322_v54 }
  0xe7   :  { %2412 = vmatpush3.msra.mxu1 %v3574_v38  ;;  %1823 = vmatmul.mubr.f32.gmra.mxu0 %v4368_v8 }
  0xe8   :  { %2413 = vmatprep.subr.mxu1 %v3619_v20 }
  0xe9   :  { %2414 = vmatpush3.msra.mxu1 %v3621_v4 }
  0xea   :  { %2415 = vmatprep.subr.mxu1 %v3683_v26 }
  0xeb   :  { %2416 = vmatpush3.msra.mxu1 %v4328_v41 }
  0xec   :  { %1927 = vmatmul.mubr.f32.vlgmr.msra.gmra.mxu1 %v4366_v15 }
  0xed   :  { %1932 = vmatprep.mubr.f32.mxu1 %v4367_v30 }
  0xef   :  { %v1999_v12 = vpop.f32.mrf.mxu0 }
  0xf0   :  { %1934 = vmatmul.mubr.f32.gmra.mxu1 %v4368_v8 }
  0xf1   :  { %v2000_v59 = vpop.f32.mrf.mxu0 }
  0xf2   :  { %v2001_v49 = vadd.f32 %v2000_v59, %v1999_v12 }
  0xf4   :  { %v212_v56 = vadd.f32 %v2001_v49, %v101_v14 }
  0xf8   :  { %v2037_v38 = vpop.f32.mrf.mxu1 }
  0xfa   :  { %v2038_v27 = vpop.f32.mrf.mxu1 }
  0xfb   :  { %v2039_v44 = vadd.f32 %v2038_v27, %v2037_v38 }
  0xfd   :  { %v459_v42 = vadd.f32 %v2039_v44, %v212_v56 }
 0x10c   :  { %v2002_v54 = vpop.f32.mrf.mxu0 }
 0x10e   :  { %v2003_v21 = vpop.f32.mrf.mxu0 }
 0x10f   :  { %v2004_v0 = vadd.f32 %v2003_v21, %v2002_v54 }
 0x111   :  { %v2075_v45 = vpop.f32.mrf.mxu0  ;;  %v227_v1 = vadd.f32 %v2004_v0, %v102_v23 }
 0x113   :  { %v2076_v18 = vpop.f32.mrf.mxu0 }
 0x114   :  { %v2077_v39 = vadd.f32 %v2076_v18, %v2075_v45 }
 0x115   :  { %v2040_v20 = vpop.f32.mrf.mxu1 }
 0x116   :  { %v604_v16 = vadd.f32 %v2077_v39, %v459_v42 }
 0x117   :  { %v2041_v4 = vpop.f32.mrf.mxu1 }
 0x118   :  { %v2078_v52 = vpop.f32.mrf.mxu0  ;;  %v2042_v13 = vadd.f32 %v2041_v4, %v2040_v20 }
 0x11a   :  { %v2079_v62 = vpop.f32.mrf.mxu0  ;;  %v466_v34 = vadd.f32 %v2042_v13, %v227_v1 }
 0x11b   :  { %v2080_v6 = vadd.f32 %v2079_v62, %v2078_v52 }
 0x11c   :  { %v2113_v26 = vpop.f32.mrf.mxu1 }
 0x11d   :  { %v613_v48 = vadd.f32 %v2080_v6, %v466_v34 }
 0x11e   :  { %v2114_v40 = vpop.f32.mrf.mxu1 }
 0x11f   :  { %v2115_v10 = vadd.f32 %v2114_v40, %v2113_v26 }
 0x121   :  { %v721_v60 = vadd.f32 %v2115_v10, %v604_v16 }
 0x122   :  { %v2116_v3 = vpop.f32.mrf.mxu1 }
 0x124   :  { %v2117_v37 = vpop.f32.mrf.mxu1 }
 0x125   :  { %v2118_v19 = vadd.f32 %v2117_v37, %v2116_v3 }
 0x127   :  { %v732_v12 = vadd.f32 %v2118_v19, %v613_v48 }
 0x136   :  { %v2151_v25 = vpop.f32.mrf.mxu0 }
 0x138   :  { %v2152_v22 = vpop.f32.mrf.mxu0 }
 0x139   :  { %v2153_v17 = vadd.f32 %v2152_v22, %v2151_v25 }
 0x13b   :  { %v900_v28 = vadd.f32 %v2153_v17, %v721_v60 }
 0x13c   :  { %v2154_v53 = vpop.f32.mrf.mxu0 }
 0x13e   :  { %v2155_v24 = vpop.f32.mrf.mxu0 }
 0x13f   :  { %v2156_v15 = vadd.f32 %v2155_v24, %v2154_v53 }
 0x140   :  { %v2189_v31 = vpop.f32.mrf.mxu1 }
 0x141   :  { %v907_v45 = vadd.f32 %v2156_v15, %v732_v12 }
 0x142   :  { %v2190_v61 = vpop.f32.mrf.mxu1 }
 0x143   :  { %v2191_v55 = vadd.f32 %v2190_v61, %v2189_v31 }
 0x144   :  { %v2192_v41 = vpop.f32.mrf.mxu1 }
 0x145   :  { %v1011_v59 = vadd.f32 %v2191_v55, %v900_v28 }
 0x146   :  { %v2193_v32 = vpop.f32.mrf.mxu1 }
 0x147   :  { %v2194_v54 = vadd.f32 %v2193_v32, %v2192_v41 }
 0x149   :  { %v1018_v26 = vadd.f32 %v2194_v54, %v907_v45 }
 0x15b   :  { %v2227_v33 = vpop.f32.mrf.mxu0 }
 0x15d   :  { %v2228_v51 = vpop.f32.mrf.mxu0 }
 0x15e   :  { %v2229_v30 = vadd.f32 %v2228_v51, %v2227_v33 }
 0x160   :  { %v1130_v20 = vadd.f32 %v2229_v30, %v1011_v59 }
 0x161   :  { %v2230_v7 = vpop.f32.mrf.mxu0 }
 0x163   :  { %v2231_v36 = vpop.f32.mrf.mxu0 }
 0x164   :  { %v2232_v18 = vadd.f32 %v2231_v36, %v2230_v7 }
 0x165   :  { %v2265_v58 = vpop.f32.mrf.mxu1 }
 0x166   :  { %v1145_v22 = vadd.f32 %v2232_v18, %v1018_v26 }
 0x167   :  { %v2266_v35 = vpop.f32.mrf.mxu1 }
 0x168   :  { %v2267_v38 = vadd.f32 %v2266_v35, %v2265_v58 }
 0x16a   :  { %v1377_v62 = vadd.f32 %v2267_v38, %v1130_v20 }
 0x16b   :  { %v2268_v11 = vpop.f32.mrf.mxu1 }
 0x16d   :  { %v2269_v5 = vpop.f32.mrf.mxu1 }
 0x16e   :  { %v2270_v40 = vadd.f32 %v2269_v5, %v2268_v11 }
 0x170   :  { %v1384_v33 = vadd.f32 %v2270_v40, %v1145_v22 }
 0x17f   :  { %v2303_v29 = vpop.f32.mrf.mxu0 }
 0x181   :  { %v2304_v9 = vpop.f32.mrf.mxu0 }
 0x182   :  { %v2305_v4 = vadd.f32 %v2304_v9, %v2303_v29 }
 0x184   :  { %v1522_v37 = vadd.f32 %v2305_v4, %v1377_v62 }
 0x185   :  { %v2306_v47 = vpop.f32.mrf.mxu0 }
 0x187   :  { %v2307_v57 = vpop.f32.mrf.mxu0 }
 0x188   :  { %v2308_v53 = vadd.f32 %v2307_v57, %v2306_v47 }
 0x189   :  { %v2341_v63 = vpop.f32.mrf.mxu1 }
 0x18a   :  { %v1531_v46 = vadd.f32 %v2308_v53, %v1384_v33 }
 0x18b   :  { %v2342_v2 = vpop.f32.mrf.mxu1 }
 0x18c   :  { %v2343_v25 = vadd.f32 %v2342_v2, %v2341_v63 }
 0x18e   :  { %v1639_v41 = vadd.f32 %v2343_v25, %v1522_v37 }
 0x18f   :  { %v2344_v21 = vpop.f32.mrf.mxu1 }
 0x191   :  { %v2345_v3 = vpop.f32.mrf.mxu1 }
 0x192   :  { %v2346_v51 = vadd.f32 %v2345_v3, %v2344_v21 }
 0x194   :  { %v1650_v36 = vadd.f32 %v2346_v51, %v1531_v46 }
 0x1a3   :  { %v2379_v8 = vpop.f32.mrf.mxu0 }
 0x1a5   :  { %v2380_v27 = vpop.f32.mrf.mxu0 }
 0x1a6   :  { %v2381_v31 = vadd.f32 %v2380_v27, %v2379_v8 }
 0x1a7   :  { %v2382_v52 = vpop.f32.mrf.mxu0 }
 0x1a8   :  { %v1818_v58 = vadd.f32 %v2381_v31, %v1639_v41 }
 0x1a9   :  { %v2383_v24 = vpop.f32.mrf.mxu0 }
 0x1aa   :  { %v2384_v7 = vadd.f32 %v2383_v24, %v2382_v52 }
 0x1ac   :  { %v2417_v61 = vpop.f32.mrf.mxu1  ;;  %v1825_v49 = vadd.f32 %v2384_v7, %v1650_v36 }
 0x1ae   :  { %v2418_v32 = vpop.f32.mrf.mxu1 }
 0x1af   :  { %v2419_v50 = vadd.f32 %v2418_v32, %v2417_v61 }
 0x1b0   :  { %v2420_v43 = vpop.f32.mrf.mxu1 }
 0x1b1   :  { %v1929_v35 = vadd.f32 %v2419_v50, %v1818_v58 }
 0x1b2   :  { %v2421_v14 = vpop.f32.mrf.mxu1 }
 0x1b3   :  { %v1939_v29 = vmax.f32 %v1929_v35, 1e-10  ;;  %v2422_v0 = vadd.f32 %v2421_v14, %v2420_v43 }
 0x1b5   :  { %2428 = vlog2.f32 %v1939_v29  ;;  %v1936_v23 = vadd.f32 %v2422_v0, %v1825_v49 }
 0x1b7   :  { %v1940_v11 = vmax.f32 %v1936_v23, 1e-10 }
 0x1b9   :  { %2430 = vlog2.f32 %v1940_v11 }
 0x1c2   :  { %v2429_v56 = vpop.eup %2428 }
 0x1c3   :  { %v1942_v44 = vmul.f32 0.6931472, %v2429_v56 }
 0x1c5   :  { %v1945_v9 = vmul.f32 0.4342945, %v1942_v44 }
 0x1c6   :  { %v2431_v39 = vpop.eup %2430 }
 0x1c7   :  { %v1944_v1 = vmul.f32 0.6931472, %v2431_v39  ;;  %1948 = vst.msk [vmem:[#allocation2] sm:$0xff] %vm1947_vm0, %v1945_v9 }
 0x1c9   :  { %v1946_v13 = vmul.f32 0.4342945, %v1944_v1 }
 0x1cb   :  { %1949 = vst.msk [vmem:[#allocation2 + $0x8] sm:$0xff] %vm1947_vm0, %v1946_v13 }
 0x1cc   :  { %2443 = shalt.err (!%p2440_p4)
}
 0x1cd   :  { %s2456_s20 = smov 128   ;;  %s2457_s21 = smov 8  }
 0x1ce   :  { %1961 = dma.vmem_to_hbm [thread:$0]  %s1956_s18, 256, %s3967_s2, [#allocation3], %s2456_s20, %s2456_s20, %s2457_s21  }
 0x1cf   :  { %2452 = dma.done.wait [#allocation3], 256  }
 0x1d0   :  { %2453 = vsyncadd [#allocation3], 4294967040 }
 0x1d1   :  { %1965 = vsyncpa [#allocation3], 1 }

</bundles_post_ra>
